<compile_context>
chip_gen: v7x
topology: tpu7x:2x2x1
jax: 0.10.0
libtpu: 0.0.40
codegen_flags: <defaults>
</compile_context>

<pallas_src>
import functools

import jax
import jax.numpy as jnp
from jax import lax
from jax.experimental import pallas as pl
from jax.experimental.pallas import tpu as pltpu


def _round_up(x, m):
    return ((x + m - 1) // m) * m


def _pick_tile(n, cap, align):
    """Tile size <= cap (multiple of `align`) that balances padding of n."""
    n_aligned = _round_up(max(n, 1), align)
    if n_aligned <= cap:
        return n_aligned, n_aligned
    n_tiles = -(-n_aligned // cap)                       # ceil
    tile = _round_up(-(-n_aligned // n_tiles), align)    # balanced tile
    return tile, tile * n_tiles


# ------------------------- Phase 1: fused MLP kernel ------------------------ #
def mlp_kernel(x_ref, w_ref, b_ref, out_ref, *, n_layers, last_act):
    """Fused Linear(+Tanh) stack on one row tile; bf16 MXU, f32 accumulate."""
    x = x_ref[...]                                     # (TR, D) f32
    for l in range(n_layers):
        y = jnp.dot(x.astype(jnp.bfloat16), w_ref[l],
                    preferred_element_type=jnp.float32) + b_ref[pl.ds(l, 1), :]
        x = jnp.tanh(y) if (l < n_layers - 1 or last_act) else y
    # Slice to the contraction width P (<= D); padded lanes beyond p are zero.
    out_ref[...] = x[:, :out_ref.shape[1]].astype(out_ref.dtype)


def _mlp_pallas(x_pad, weights, biases, *, row_tile, out_width, last_act):
    R_pad, D = x_pad.shape
    L = weights.shape[0]
    kernel = functools.partial(mlp_kernel, n_layers=L, last_act=last_act)
    return pl.pallas_call(
        kernel,
        out_shape=jax.ShapeDtypeStruct((R_pad, out_width), jnp.bfloat16),
        grid=(R_pad // row_tile,),
        in_specs=[
            pl.BlockSpec((row_tile, D), lambda i: (i, 0)),    # row tile
            pl.BlockSpec((L, D, D), lambda i: (0, 0, 0)),     # stacked weights
            pl.BlockSpec((L, D), lambda i: (0, 0)),           # stacked biases
        ],
        out_specs=pl.BlockSpec((row_tile, out_width), lambda i: (i, 0)),
        compiler_params=pltpu.CompilerParams(
            dimension_semantics=("parallel",)),
    )(x_pad, weights, biases)


# --------------------- Phase 2: tiled outer-product kernel ------------------ #
def outer_product_kernel(out_b_ref, out_t_ref, bias_ref, out_ref):
    """out[n, m] = sum_p out_b[n, p] * out_t[m, p] + bias  (one (TN, TM) tile)."""
    g = lax.dot_general(
        out_b_ref[...], out_t_ref[...],                 # bf16 x bf16 -> f32
        dimension_numbers=(((1,), (1,)), ((), ())),
        preferred_element_type=jnp.float32)             # (TN, TM)
    # NOTE: emit bf16 here instead if downstream tolerates it (halves the
    # N*M writeback, the only large HBM traffic in this kernel).
    out_ref[...] = g + bias_ref[0]                      # scalar bias from SMEM


# ------------------------ one-time parameter packing ------------------------ #
def pack_deeponet_params(branch_params, trunk_params):
    """Pad/stack all Linear weights (bf16) and biases (f32) once, outside jit."""
    dims = []
    for w, _ in branch_params + trunk_params:
        dims += [w.shape[0], w.shape[1]]
    D = _round_up(max(dims), 128)

    def pack(params):
        def pad_w(w):
            return jnp.pad(w.astype(jnp.float32),
                           ((0, D - w.shape[0]), (0, D - w.shape[1])))

        def pad_b(b):
            b = b.reshape(-1).astype(jnp.float32)
            return jnp.pad(b, (0, D - b.shape[0]))

        ws = jnp.stack([pad_w(w) for w, _ in params]).astype(jnp.bfloat16)
        bs = jnp.stack([pad_b(b) for _, b in params])
        return ws, bs

    bw, bb = pack(branch_params)
    tw, tb = pack(trunk_params)
    return bw, bb, tw, tb


# ------------------------------- forward pass ------------------------------- #
@functools.partial(jax.jit, static_argnames=("p",))
def deeponet_forward(noise, coords, branch_w, branch_b, trunk_w, trunk_b,
                     bias, *, p):
    """Returns g_uy_pred of shape (N*M,), matching DeepONet.forward (share=1)."""
    N, f_b = noise.shape
    M, f_c = coords.shape
    D = branch_w.shape[1]
    P = min(_round_up(p, 128), D)                       # contraction width

    # Output tiling: lane-dense TM, sublane-aligned TN; tiles chosen to
    # balance padding rather than blindly rounding up to the cap.
    TN, N_pad = _pick_tile(N, 512, 8)
    TM, M_pad = _pick_tile(M, 1024, 128)

    noise_pad = jnp.pad(noise.astype(jnp.float32),
                        ((0, N_pad - N), (0, D - f_b)))
    coords_pad = jnp.pad(coords.astype(jnp.float32),
                         ((0, M_pad - M), (0, D - f_c)))

    # Phase 1: branch / trunk MLPs, each computed exactly once.
    out_b = _mlp_pallas(noise_pad, branch_w, branch_b,
                        row_tile=TN, out_width=P, last_act=False)  # (N_pad, P)
    out_t = _mlp_pallas(coords_pad, trunk_w, trunk_b,
                        row_tile=TM, out_width=P, last_act=True)   # (M_pad, P)

    # Phase 2: tiled outer product over P.
    bias_smem = bias.reshape(-1).astype(jnp.float32)    # (1,) scalar in SMEM
    out_padded = pl.pallas_call(
        outer_product_kernel,
        out_shape=jax.ShapeDtypeStruct((N_pad, M_pad), jnp.float32),
        grid=(N_pad // TN, M_pad // TM),
        in_specs=[
            pl.BlockSpec((TN, P), lambda i, j: (i, 0)),           # out_b tile
            pl.BlockSpec((TM, P), lambda i, j: (j, 0)),           # out_t tile
            pl.BlockSpec(memory_space=pltpu.MemorySpace.SMEM),    # scalar bias
        ],
        out_specs=pl.BlockSpec((TN, TM), lambda i, j: (i, j)),
        compiler_params=pltpu.CompilerParams(
            dimension_semantics=("parallel", "parallel")),
    )(out_b, out_t, bias_smem)

    return out_padded[:N, :M].reshape(N * M)


# ------------------------- parameter construction --------------------------- #
def init_linear(key, in_dim, out_dim):
    kw, kb = jax.random.split(key)
    bound = 1.0 / (in_dim ** 0.5)
    w = jax.random.uniform(kw, (in_dim, out_dim), jnp.float32, -bound, bound)
    b = jax.random.uniform(kb, (1, out_dim), jnp.float32, -bound, bound)
    return w, b


def init_mlp(key, dims):
    params = []
    keys = jax.random.split(key, len(dims) - 1)
    for k, din, dout in zip(keys, dims[:-1], dims[1:]):
        params.append(init_linear(k, din, dout))
    return params


# ---------------------------- pure-JAX reference ---------------------------- #
def reference_forward(noise, coords, branch_params, trunk_params, bias):
    """Mirrors the kernel's numerics (bf16 weights/activations, f32 accum)."""
    def dense(x, w, b, activate):
        y = jnp.dot(x.astype(jnp.bfloat16), w.astype(jnp.bfloat16),
                    preferred_element_type=jnp.float32) + b.reshape(1, -1)
        return jnp.tanh(y) if activate else y

    x = noise.astype(jnp.float32)
    for i, (w, b) in enumerate(branch_params):
        x = dense(x, w, b, activate=(i < len(branch_params) - 1))
    t = coords.astype(jnp.float32)
    for w, b in trunk_params:
        t = dense(t, w, b, activate=True)

    g = lax.dot_general(x.astype(jnp.bfloat16), t.astype(jnp.bfloat16),
                        dimension_numbers=(((1,), (1,)), ((), ())),
                        preferred_element_type=jnp.float32)
    N, M = noise.shape[0], coords.shape[0]
    # repeat_interleave(out_b, M) * tile(out_t, N) summed over p == g[n, m]
    return (g + bias[0]).reshape(N * M)


# ----------------------------------- main ------------------------------------ #
if __name__ == "__main__":
    # Small shapes consistent with DeepONet(noise_feature, coords_features, p)
    N = 2                # number of noise samples (branch batch)
    M = 16               # number of spatial coordinates (trunk batch)
    noise_feature = 8    # branch in_dim (sensor count)
    coords_features = 2  # trunk in_dim (spatial dim d)
    p = 32               # latent dimension p
    branch_width = 32
    trunk_width = 64

    key = jax.random.PRNGKey(0)
    k_noise, k_coords, k_branch, k_trunk = jax.random.split(key, 4)

    noise = jax.random.normal(k_noise, (N, noise_feature), jnp.float32)
    coords = jax.random.normal(k_coords, (M, coords_features), jnp.float32)

    branch_params = init_mlp(
        k_branch, [noise_feature, branch_width, branch_width,
                   branch_width, branch_width, p])
    trunk_params = init_mlp(
        k_trunk, [coords_features, trunk_width, trunk_width,
                  trunk_width, trunk_width, p])
    bias_params = jnp.ones((1,), jnp.float32)   # torch.ones(1) parameter

    # One-time packing (hoisted out of the jitted forward).
    branch_w, branch_b, trunk_w, trunk_b = pack_deeponet_params(
        branch_params, trunk_params)

    out = deeponet_forward(noise, coords, branch_w, branch_b, trunk_w,
                           trunk_b, bias_params, p=p)
    out = jax.block_until_ready(out)

    ref = reference_forward(noise, coords, branch_params, trunk_params,
                            bias_params)
    assert out.shape == (N * M,)
    assert jnp.allclose(out, ref, atol=1e-3, rtol=1e-3), (out, ref)

    print("KERNEL_OK")
</pallas_src>

<mosaic_0001>
module attributes {stable_mosaic.version = 11 : i64} {
  func.func @mlp_kernel(%arg0: i32, %arg1: memref<128x128xf32, #tpu.memory_space<vmem>>, %arg2: memref<5x128x128xbf16, #tpu.memory_space<vmem>>, %arg3: memref<5x128xf32, #tpu.memory_space<vmem>>, %arg4: memref<128x128xbf16, #tpu.memory_space<vmem>>) attributes {dimension_semantics = [#tpu.dimension_semantics<parallel>], iteration_bounds = array<i64: 1>, scalar_prefetch = 0 : i64, scratch_operands = 0 : i64, tpu.core_type = #tpu.core_type<tc>, window_params = [{transform_indices = @transform_0, window_bounds = array<i64: 128, 128>}, {pipeline_mode = #tpu.pipeline_mode<synchronous>, transform_indices = @transform_1, window_bounds = array<i64: 5, 128, 128>}, {pipeline_mode = #tpu.pipeline_mode<synchronous>, transform_indices = @transform_2, window_bounds = array<i64: 5, 128>}, {transform_indices = @transform_3, window_bounds = array<i64: 128, 128>}]} {
    %c0 = arith.constant 0 : index
    %c0_0 = arith.constant 0 : index
    %0 = vector.load %arg1[%c0, %c0_0] : memref<128x128xf32, #tpu.memory_space<vmem>>, vector<128x128xf32>
    %1 = arith.truncf %0 : vector<128x128xf32> to vector<128x128xbf16>
    %c0_1 = arith.constant 0 : index
    %c0_2 = arith.constant 0 : index
    %c0_3 = arith.constant 0 : index
    %2 = vector.load %arg2[%c0_1, %c0_2, %c0_3] : memref<5x128x128xbf16, #tpu.memory_space<vmem>>, vector<1x128x128xbf16>
    %3 = vector.shape_cast %2 : vector<1x128x128xbf16> to vector<128x128xbf16>
    %cst = arith.constant dense<0.000000e+00> : vector<128x128xf32>
    %4 = tpu.matmul %1, %3, %cst {dimension_numbers = #tpu.dot_dimension_numbers<[1], [0], [0], [1], [0, 0, 1, 1], [], []>} : vector<128x128xbf16>, vector<128x128xbf16>, vector<128x128xf32> -> vector<128x128xf32>
    %c0_4 = arith.constant 0 : index
    %c0_5 = arith.constant 0 : index
    %5 = vector.load %arg3[%c0_4, %c0_5] : memref<5x128xf32, #tpu.memory_space<vmem>>, vector<1x128xf32>
    %6 = vector.broadcast %5 : vector<1x128xf32> to vector<128x128xf32>
    %7 = arith.addf %4, %6 : vector<128x128xf32>
    %8 = math.tanh %7 : vector<128x128xf32>
    %9 = arith.truncf %8 : vector<128x128xf32> to vector<128x128xbf16>
    %c1 = arith.constant 1 : index
    %c0_6 = arith.constant 0 : index
    %c0_7 = arith.constant 0 : index
    %10 = vector.load %arg2[%c1, %c0_6, %c0_7] : memref<5x128x128xbf16, #tpu.memory_space<vmem>>, vector<1x128x128xbf16>
    %11 = vector.shape_cast %10 : vector<1x128x128xbf16> to vector<128x128xbf16>
    %cst_8 = arith.constant dense<0.000000e+00> : vector<128x128xf32>
    %12 = tpu.matmul %9, %11, %cst_8 {dimension_numbers = #tpu.dot_dimension_numbers<[1], [0], [0], [1], [0, 0, 1, 1], [], []>} : vector<128x128xbf16>, vector<128x128xbf16>, vector<128x128xf32> -> vector<128x128xf32>
    %c1_9 = arith.constant 1 : index
    %c0_10 = arith.constant 0 : index
    %13 = vector.load %arg3[%c1_9, %c0_10] : memref<5x128xf32, #tpu.memory_space<vmem>>, vector<1x128xf32>
    %14 = vector.broadcast %13 : vector<1x128xf32> to vector<128x128xf32>
    %15 = arith.addf %12, %14 : vector<128x128xf32>
    %16 = math.tanh %15 : vector<128x128xf32>
    %17 = arith.truncf %16 : vector<128x128xf32> to vector<128x128xbf16>
    %c2 = arith.constant 2 : index
    %c0_11 = arith.constant 0 : index
    %c0_12 = arith.constant 0 : index
    %18 = vector.load %arg2[%c2, %c0_11, %c0_12] : memref<5x128x128xbf16, #tpu.memory_space<vmem>>, vector<1x128x128xbf16>
    %19 = vector.shape_cast %18 : vector<1x128x128xbf16> to vector<128x128xbf16>
    %cst_13 = arith.constant dense<0.000000e+00> : vector<128x128xf32>
    %20 = tpu.matmul %17, %19, %cst_13 {dimension_numbers = #tpu.dot_dimension_numbers<[1], [0], [0], [1], [0, 0, 1, 1], [], []>} : vector<128x128xbf16>, vector<128x128xbf16>, vector<128x128xf32> -> vector<128x128xf32>
    %c2_14 = arith.constant 2 : index
    %c0_15 = arith.constant 0 : index
    %21 = vector.load %arg3[%c2_14, %c0_15] : memref<5x128xf32, #tpu.memory_space<vmem>>, vector<1x128xf32>
    %22 = vector.broadcast %21 : vector<1x128xf32> to vector<128x128xf32>
    %23 = arith.addf %20, %22 : vector<128x128xf32>
    %24 = math.tanh %23 : vector<128x128xf32>
    %25 = arith.truncf %24 : vector<128x128xf32> to vector<128x128xbf16>
    %c3 = arith.constant 3 : index
    %c0_16 = arith.constant 0 : index
    %c0_17 = arith.constant 0 : index
    %26 = vector.load %arg2[%c3, %c0_16, %c0_17] : memref<5x128x128xbf16, #tpu.memory_space<vmem>>, vector<1x128x128xbf16>
    %27 = vector.shape_cast %26 : vector<1x128x128xbf16> to vector<128x128xbf16>
    %cst_18 = arith.constant dense<0.000000e+00> : vector<128x128xf32>
    %28 = tpu.matmul %25, %27, %cst_18 {dimension_numbers = #tpu.dot_dimension_numbers<[1], [0], [0], [1], [0, 0, 1, 1], [], []>} : vector<128x128xbf16>, vector<128x128xbf16>, vector<128x128xf32> -> vector<128x128xf32>
    %c3_19 = arith.constant 3 : index
    %c0_20 = arith.constant 0 : index
    %29 = vector.load %arg3[%c3_19, %c0_20] : memref<5x128xf32, #tpu.memory_space<vmem>>, vector<1x128xf32>
    %30 = vector.broadcast %29 : vector<1x128xf32> to vector<128x128xf32>
    %31 = arith.addf %28, %30 : vector<128x128xf32>
    %32 = math.tanh %31 : vector<128x128xf32>
    %33 = arith.truncf %32 : vector<128x128xf32> to vector<128x128xbf16>
    %c4 = arith.constant 4 : index
    %c0_21 = arith.constant 0 : index
    %c0_22 = arith.constant 0 : index
    %34 = vector.load %arg2[%c4, %c0_21, %c0_22] : memref<5x128x128xbf16, #tpu.memory_space<vmem>>, vector<1x128x128xbf16>
    %35 = vector.shape_cast %34 : vector<1x128x128xbf16> to vector<128x128xbf16>
    %cst_23 = arith.constant dense<0.000000e+00> : vector<128x128xf32>
    %36 = tpu.matmul %33, %35, %cst_23 {dimension_numbers = #tpu.dot_dimension_numbers<[1], [0], [0], [1], [0, 0, 1, 1], [], []>} : vector<128x128xbf16>, vector<128x128xbf16>, vector<128x128xf32> -> vector<128x128xf32>
    %c4_24 = arith.constant 4 : index
    %c0_25 = arith.constant 0 : index
    %37 = vector.load %arg3[%c4_24, %c0_25] : memref<5x128xf32, #tpu.memory_space<vmem>>, vector<1x128xf32>
    %38 = vector.broadcast %37 : vector<1x128xf32> to vector<128x128xf32>
    %39 = arith.addf %36, %38 : vector<128x128xf32>
    %40 = math.tanh %39 : vector<128x128xf32>
    %41 = arith.truncf %40 : vector<128x128xf32> to vector<128x128xbf16>
    %c0_26 = arith.constant 0 : index
    %c0_27 = arith.constant 0 : index
    %42 = vector.load %arg4[%c0_26, %c0_27] : memref<128x128xbf16, #tpu.memory_space<vmem>>, vector<128x128xbf16>
    tpu.vector_store %arg4[%c0_26, %c0_27], %41 {strides = array<i32>} : memref<128x128xbf16, #tpu.memory_space<vmem>>, vector<128x128xbf16>,
    return
  }
  func.func @transform_0(%arg0: i32) -> (i32, i32) {
    %c0_i32 = arith.constant 0 : i32
    %c0_i32_0 = arith.constant 0 : i32
    return %arg0, %c0_i32 : i32, i32
  }
  func.func @transform_1(%arg0: i32) -> (i32, i32, i32) {
    %c0_i32 = arith.constant 0 : i32
    %c0_i32_0 = arith.constant 0 : i32
    %c0_i32_1 = arith.constant 0 : i32
    %c0_i32_2 = arith.constant 0 : i32
    return %c0_i32, %c0_i32_0, %c0_i32_1 : i32, i32, i32
  }
  func.func @transform_2(%arg0: i32) -> (i32, i32) {
    %c0_i32 = arith.constant 0 : i32
    %c0_i32_0 = arith.constant 0 : i32
    %c0_i32_1 = arith.constant 0 : i32
    return %c0_i32, %c0_i32_0 : i32, i32
  }
  func.func @transform_3(%arg0: i32) -> (i32, i32) {
    %c0_i32 = arith.constant 0 : i32
    %c0_i32_0 = arith.constant 0 : i32
    return %arg0, %c0_i32 : i32, i32
  }
}

module attributes {stable_mosaic.version = 11 : i64} {
  func.func @outer_product_kernel(%arg0: i32, %arg1: i32, %arg2: memref<8x128xbf16, #tpu.memory_space<vmem>>, %arg3: memref<128x128xbf16, #tpu.memory_space<vmem>>, %arg4: memref<1xf32, #tpu.memory_space<smem>>, %arg5: memref<8x128xf32, #tpu.memory_space<vmem>>) attributes {dimension_semantics = [#tpu.dimension_semantics<parallel>, #tpu.dimension_semantics<parallel>], iteration_bounds = array<i64: 1, 1>, scalar_prefetch = 0 : i64, scratch_operands = 0 : i64, tpu.core_type = #tpu.core_type<tc>, window_params = [{transform_indices = @transform_0, window_bounds = array<i64: 8, 128>}, {transform_indices = @transform_1, window_bounds = array<i64: 128, 128>}, {transform_indices = @transform_2, window_bounds = array<i64: 1>}, {transform_indices = @transform_3, window_bounds = array<i64: 8, 128>}]} {
    %c0 = arith.constant 0 : index
    %c0_0 = arith.constant 0 : index
    %0 = vector.load %arg2[%c0, %c0_0] : memref<8x128xbf16, #tpu.memory_space<vmem>>, vector<8x128xbf16>
    %c0_1 = arith.constant 0 : index
    %c0_2 = arith.constant 0 : index
    %1 = vector.load %arg3[%c0_1, %c0_2] : memref<128x128xbf16, #tpu.memory_space<vmem>>, vector<128x128xbf16>
    %cst = arith.constant dense<0.000000e+00> : vector<8x128xf32>
    %2 = tpu.matmul %0, %1, %cst {dimension_numbers = #tpu.dot_dimension_numbers<[1], [1], [0], [0], [0, 0, 1, 0], [], []>} : vector<8x128xbf16>, vector<128x128xbf16>, vector<8x128xf32> -> vector<8x128xf32>
    %c0_3 = arith.constant 0 : index
    %3 = memref.load %arg4[%c0_3] : memref<1xf32, #tpu.memory_space<smem>>
    %4 = vector.broadcast %3 : f32 to vector<8x128xf32>
    %5 = arith.addf %2, %4 : vector<8x128xf32>
    %c0_4 = arith.constant 0 : index
    %c0_5 = arith.constant 0 : index
    %6 = vector.load %arg5[%c0_4, %c0_5] : memref<8x128xf32, #tpu.memory_space<vmem>>, vector<8x128xf32>
    tpu.vector_store %arg5[%c0_4, %c0_5], %5 {strides = array<i32>} : memref<8x128xf32, #tpu.memory_space<vmem>>, vector<8x128xf32>,
    return
  }
  func.func @transform_0(%arg0: i32, %arg1: i32) -> (i32, i32) {
    %c0_i32 = arith.constant 0 : i32
    %c0_i32_0 = arith.constant 0 : i32
    return %arg0, %c0_i32 : i32, i32
  }
  func.func @transform_1(%arg0: i32, %arg1: i32) -> (i32, i32) {
    %c0_i32 = arith.constant 0 : i32
    %c0_i32_0 = arith.constant 0 : i32
    return %arg1, %c0_i32 : i32, i32
  }
  func.func @transform_2(%arg0: i32, %arg1: i32) -> i32 {
    %c0_i32 = arith.constant 0 : i32
    %c0_i32_0 = arith.constant 0 : i32
    return %c0_i32 : i32
  }
  func.func @transform_3(%arg0: i32, %arg1: i32) -> (i32, i32) {
    %c0_i32 = arith.constant 0 : i32
    return %arg0, %arg1 : i32, i32
  }
}

module attributes {stable_mosaic.version = 11 : i64} {
  func.func @mlp_kernel(%arg0: i32, %arg1: memref<8x128xf32, #tpu.memory_space<vmem>>, %arg2: memref<5x128x128xbf16, #tpu.memory_space<vmem>>, %arg3: memref<5x128xf32, #tpu.memory_space<vmem>>, %arg4: memref<8x128xbf16, #tpu.memory_space<vmem>>) attributes {dimension_semantics = [#tpu.dimension_semantics<parallel>], iteration_bounds = array<i64: 1>, scalar_prefetch = 0 : i64, scratch_operands = 0 : i64, tpu.core_type = #tpu.core_type<tc>, window_params = [{transform_indices = @transform_0, window_bounds = array<i64: 8, 128>}, {pipeline_mode = #tpu.pipeline_mode<synchronous>, transform_indices = @transform_1, window_bounds = array<i64: 5, 128, 128>}, {pipeline_mode = #tpu.pipeline_mode<synchronous>, transform_indices = @transform_2, window_bounds = array<i64: 5, 128>}, {transform_indices = @transform_3, window_bounds = array<i64: 8, 128>}]} {
    %c0 = arith.constant 0 : index
    %c0_0 = arith.constant 0 : index
    %0 = vector.load %arg1[%c0, %c0_0] : memref<8x128xf32, #tpu.memory_space<vmem>>, vector<8x128xf32>
    %1 = arith.truncf %0 : vector<8x128xf32> to vector<8x128xbf16>
    %c0_1 = arith.constant 0 : index
    %c0_2 = arith.constant 0 : index
    %c0_3 = arith.constant 0 : index
    %2 = vector.load %arg2[%c0_1, %c0_2, %c0_3] : memref<5x128x128xbf16, #tpu.memory_space<vmem>>, vector<1x128x128xbf16>
    %3 = vector.shape_cast %2 : vector<1x128x128xbf16> to vector<128x128xbf16>
    %cst = arith.constant dense<0.000000e+00> : vector<8x128xf32>
    %4 = tpu.matmul %1, %3, %cst {dimension_numbers = #tpu.dot_dimension_numbers<[1], [0], [0], [1], [0, 0, 1, 1], [], []>} : vector<8x128xbf16>, vector<128x128xbf16>, vector<8x128xf32> -> vector<8x128xf32>
    %c0_4 = arith.constant 0 : index
    %c0_5 = arith.constant 0 : index
    %5 = vector.load %arg3[%c0_4, %c0_5] : memref<5x128xf32, #tpu.memory_space<vmem>>, vector<1x128xf32>
    %6 = vector.broadcast %5 : vector<1x128xf32> to vector<8x128xf32>
    %7 = arith.addf %4, %6 : vector<8x128xf32>
    %8 = math.tanh %7 : vector<8x128xf32>
    %9 = arith.truncf %8 : vector<8x128xf32> to vector<8x128xbf16>
    %c1 = arith.constant 1 : index
    %c0_6 = arith.constant 0 : index
    %c0_7 = arith.constant 0 : index
    %10 = vector.load %arg2[%c1, %c0_6, %c0_7] : memref<5x128x128xbf16, #tpu.memory_space<vmem>>, vector<1x128x128xbf16>
    %11 = vector.shape_cast %10 : vector<1x128x128xbf16> to vector<128x128xbf16>
    %cst_8 = arith.constant dense<0.000000e+00> : vector<8x128xf32>
    %12 = tpu.matmul %9, %11, %cst_8 {dimension_numbers = #tpu.dot_dimension_numbers<[1], [0], [0], [1], [0, 0, 1, 1], [], []>} : vector<8x128xbf16>, vector<128x128xbf16>, vector<8x128xf32> -> vector<8x128xf32>
    %c1_9 = arith.constant 1 : index
    %c0_10 = arith.constant 0 : index
    %13 = vector.load %arg3[%c1_9, %c0_10] : memref<5x128xf32, #tpu.memory_space<vmem>>, vector<1x128xf32>
    %14 = vector.broadcast %13 : vector<1x128xf32> to vector<8x128xf32>
    %15 = arith.addf %12, %14 : vector<8x128xf32>
    %16 = math.tanh %15 : vector<8x128xf32>
    %17 = arith.truncf %16 : vector<8x128xf32> to vector<8x128xbf16>
    %c2 = arith.constant 2 : index
    %c0_11 = arith.constant 0 : index
    %c0_12 = arith.constant 0 : index
    %18 = vector.load %arg2[%c2, %c0_11, %c0_12] : memref<5x128x128xbf16, #tpu.memory_space<vmem>>, vector<1x128x128xbf16>
    %19 = vector.shape_cast %18 : vector<1x128x128xbf16> to vector<128x128xbf16>
    %cst_13 = arith.constant dense<0.000000e+00> : vector<8x128xf32>
    %20 = tpu.matmul %17, %19, %cst_13 {dimension_numbers = #tpu.dot_dimension_numbers<[1], [0], [0], [1], [0, 0, 1, 1], [], []>} : vector<8x128xbf16>, vector<128x128xbf16>, vector<8x128xf32> -> vector<8x128xf32>
    %c2_14 = arith.constant 2 : index
    %c0_15 = arith.constant 0 : index
    %21 = vector.load %arg3[%c2_14, %c0_15] : memref<5x128xf32, #tpu.memory_space<vmem>>, vector<1x128xf32>
    %22 = vector.broadcast %21 : vector<1x128xf32> to vector<8x128xf32>
    %23 = arith.addf %20, %22 : vector<8x128xf32>
    %24 = math.tanh %23 : vector<8x128xf32>
    %25 = arith.truncf %24 : vector<8x128xf32> to vector<8x128xbf16>
    %c3 = arith.constant 3 : index
    %c0_16 = arith.constant 0 : index
    %c0_17 = arith.constant 0 : index
    %26 = vector.load %arg2[%c3, %c0_16, %c0_17] : memref<5x128x128xbf16, #tpu.memory_space<vmem>>, vector<1x128x128xbf16>
    %27 = vector.shape_cast %26 : vector<1x128x128xbf16> to vector<128x128xbf16>
    %cst_18 = arith.constant dense<0.000000e+00> : vector<8x128xf32>
    %28 = tpu.matmul %25, %27, %cst_18 {dimension_numbers = #tpu.dot_dimension_numbers<[1], [0], [0], [1], [0, 0, 1, 1], [], []>} : vector<8x128xbf16>, vector<128x128xbf16>, vector<8x128xf32> -> vector<8x128xf32>
    %c3_19 = arith.constant 3 : index
    %c0_20 = arith.constant 0 : index
    %29 = vector.load %arg3[%c3_19, %c0_20] : memref<5x128xf32, #tpu.memory_space<vmem>>, vector<1x128xf32>
    %30 = vector.broadcast %29 : vector<1x128xf32> to vector<8x128xf32>
    %31 = arith.addf %28, %30 : vector<8x128xf32>
    %32 = math.tanh %31 : vector<8x128xf32>
    %33 = arith.truncf %32 : vector<8x128xf32> to vector<8x128xbf16>
    %c4 = arith.constant 4 : index
    %c0_21 = arith.constant 0 : index
    %c0_22 = arith.constant 0 : index
    %34 = vector.load %arg2[%c4, %c0_21, %c0_22] : memref<5x128x128xbf16, #tpu.memory_space<vmem>>, vector<1x128x128xbf16>
    %35 = vector.shape_cast %34 : vector<1x128x128xbf16> to vector<128x128xbf16>
    %cst_23 = arith.constant dense<0.000000e+00> : vector<8x128xf32>
    %36 = tpu.matmul %33, %35, %cst_23 {dimension_numbers = #tpu.dot_dimension_numbers<[1], [0], [0], [1], [0, 0, 1, 1], [], []>} : vector<8x128xbf16>, vector<128x128xbf16>, vector<8x128xf32> -> vector<8x128xf32>
    %c4_24 = arith.constant 4 : index
    %c0_25 = arith.constant 0 : index
    %37 = vector.load %arg3[%c4_24, %c0_25] : memref<5x128xf32, #tpu.memory_space<vmem>>, vector<1x128xf32>
    %38 = vector.broadcast %37 : vector<1x128xf32> to vector<8x128xf32>
    %39 = arith.addf %36, %38 : vector<8x128xf32>
    %40 = arith.truncf %39 : vector<8x128xf32> to vector<8x128xbf16>
    %c0_26 = arith.constant 0 : index
    %c0_27 = arith.constant 0 : index
    %41 = vector.load %arg4[%c0_26, %c0_27] : memref<8x128xbf16, #tpu.memory_space<vmem>>, vector<8x128xbf16>
    tpu.vector_store %arg4[%c0_26, %c0_27], %40 {strides = array<i32>} : memref<8x128xbf16, #tpu.memory_space<vmem>>, vector<8x128xbf16>,
    return
  }
  func.func @transform_0(%arg0: i32) -> (i32, i32) {
    %c0_i32 = arith.constant 0 : i32
    %c0_i32_0 = arith.constant 0 : i32
    return %arg0, %c0_i32 : i32, i32
  }
  func.func @transform_1(%arg0: i32) -> (i32, i32, i32) {
    %c0_i32 = arith.constant 0 : i32
    %c0_i32_0 = arith.constant 0 : i32
    %c0_i32_1 = arith.constant 0 : i32
    %c0_i32_2 = arith.constant 0 : i32
    return %c0_i32, %c0_i32_0, %c0_i32_1 : i32, i32, i32
  }
  func.func @transform_2(%arg0: i32) -> (i32, i32) {
    %c0_i32 = arith.constant 0 : i32
    %c0_i32_0 = arith.constant 0 : i32
    %c0_i32_1 = arith.constant 0 : i32
    return %c0_i32, %c0_i32_0 : i32, i32
  }
  func.func @transform_3(%arg0: i32) -> (i32, i32) {
    %c0_i32 = arith.constant 0 : i32
    %c0_i32_0 = arith.constant 0 : i32
    return %arg0, %c0_i32 : i32, i32
  }
}

</mosaic_0001>

<bundles_post_ra>
// kernel: deeponet_forward.5
= control target key start
LH: loop header
LB: loop body
LE: loop exit
PB: predicated region body
PF: predicated region fallthrough
CT: control target
= control target key end

     0   :  { %v175_v0 = vmov 0.0   ;;  %vm176_vm0 = vmmov 0   ;;  %s230_s1 = inlined_call_operand.vmem [shape: bf16[128,128], index: 1, kind: input, shape index: {}]   ;;  %s231_s0 = inlined_call_operand.vmem [shape: bf16[8,128], index: 0, kind: input, shape index: {}]   ;;  %s232_s2 = inlined_call_operand.<no memory space> [shape: f32[1], index: 2, kind: input, shape index: {}]   ;;  %s233_s3 = inlined_call_operand.vmem [shape: f32[8,128], index: 3, kind: output, shape index: {}]  }
   0x1   :  { %145 = vmatprep.subr.bf16.mxu0 %v175_v0  ;;  %v167_v1 = vld [vmem:[%s230_s1] sm:$0xff]   ;;  %161 = vmatprep.mubr.msk.bf16.mxu0 %vm176_vm0, %v175_v0  ;;  %v168_v2 = vld [vmem:[%s230_s1 + $0x8] sm:$0xff]   ;;  %v169_v3 = vld [vmem:[%s230_s1 + $0x10] sm:$0xff]   ;;  %v34_v10 = vstv %s232_s2 }
   0x2   :  { %146 = vmatpush3.bf16.xpose.msra.mxu0 %v167_v1  ;;  %v170_v4 = vld [vmem:[%s230_s1 + $0x18] sm:$0xff]   ;;  %v171_v5 = vld [vmem:[%s230_s1 + $0x20] sm:$0xff]   ;;  %v172_v6 = vld [vmem:[%s230_s1 + $0x28] sm:$0xff]  }
   0x3   :  { %147 = vmatprep.subr.bf16.mxu0 %v175_v0  ;;  %v173_v7 = vld [vmem:[%s230_s1 + $0x30] sm:$0xff]   ;;  %v174_v8 = vld [vmem:[%s230_s1 + $0x38] sm:$0xff]   ;;  %v16_v9 = vld [vmem:[%s231_s0] sm:$0xf] }
   0xa   :  { %148 = vmatpush3.bf16.xpose.msra.mxu0 %v168_v2 }
   0xb   :  { %149 = vmatprep.subr.bf16.mxu0 %v175_v0 }
  0x12   :  { %150 = vmatpush3.bf16.xpose.msra.mxu0 %v169_v3 }
  0x13   :  { %151 = vmatprep.subr.bf16.mxu0 %v175_v0 }
  0x1a   :  { %152 = vmatpush3.bf16.xpose.msra.mxu0 %v170_v4 }
  0x1b   :  { %153 = vmatprep.subr.bf16.mxu0 %v175_v0 }
  0x22   :  { %154 = vmatpush3.bf16.xpose.msra.mxu0 %v171_v5 }
  0x23   :  { %155 = vmatprep.subr.bf16.mxu0 %v175_v0 }
  0x2a   :  { %156 = vmatpush3.bf16.xpose.msra.mxu0 %v172_v6 }
  0x2b   :  { %157 = vmatprep.subr.bf16.mxu0 %v175_v0 }
  0x32   :  { %158 = vmatpush3.bf16.xpose.msra.mxu0 %v173_v7 }
  0x33   :  { %159 = vmatprep.subr.bf16.mxu0 %v175_v0 }
  0x3a   :  { %160 = vmatpush3.bf16.xpose.msra.mxu0 %v174_v8 }
  0x41   :  { %162 = vmatmul.mubr.bf16.vlgmr.msra.gmra.mrb[0].mxu0 %v16_v9 }
 0x114   :  { %v117_v11 = vpop.f32.mrb[0].mxu0 }
 0x115   :  { %v118_v12 = vadd.f32 %v117_v11, %v34_v10  ;;  %v163_v13 = vpop.f32.mrb[1].mxu0 }
 0x116   :  { %v120_v14 = vpop.f32.mrb[2].mxu0 }
 0x117   :  { %123 = vst [vmem:[%s233_s3] sm:$0xff] %v118_v12  ;;  %v164_v15 = vpop.f32.mrb[3].mxu0 }

// kernel: deeponet_forward.4
= control target key start
LH: loop header
LB: loop body
LE: loop exit
PB: predicated region body
PF: predicated region fallthrough
CT: control target
= control target key end

     0   :  { %8 = vsyncpa [#allocation3], 0  ;;  %s1691_s12 = smov [#allocation2]   ;;  %s1843_s0 = inlined_call_operand.vmem [shape: f32[128,128], index: 0, kind: input, shape index: {}]   ;;  %s1844_s1 = inlined_call_operand.hbm [shape: bf16[5,128,128], index: 1, kind: input, shape index: {}]   ;;  %s1845_s2 = inlined_call_operand.vmem [shape: f32[5,128], index: 2, kind: input, shape index: {}]   ;;  %s1846_s3 = inlined_call_operand.vmem [shape: bf16[128,128], index: 3, kind: output, shape index: {}]  }
   0x1   :  { %s16_s13 = sshll.u32 %s1691_s12, 4  ;;  %s1667_s16 = scalar_lea.hbm %s1844_s1, 5120  ;;  %s17_s13 = int_to_ptr.vmem [resolvable:$true] %s16_s13 }
   0x2   :  { %p1668_p0 = scmp.ne.s32.totalorder %s1844_s1, %s1667_s16  ;;  %p1671_p1 = scmp.lt.u32.totalorder %s1667_s16, %s1844_s1 }
   0x4   :  { %p1673_p2 = pnand %p1671_p1, %p1668_p0 }
   0x6   :  { %1676 = shalt.err (!%p1673_p2)
}
   0x7   :  { %s1677_s21 = scalar_lea.vmem %s17_s13, 5120  ;;  %p1682_p4 = scmp.lt.s32.totalorder %s17_s13, %s17_s13 }
   0x8   :  { %p1678_p3 = scmp.ne.s32.totalorder %s17_s13, %s1677_s21  ;;  %p1683_p5 = scmp.lt.s32.totalorder %s1677_s21, %s1677_s21 }
   0xa   :  { %p1684_p6 = por %p1683_p5, %p1682_p4 }
   0xc   :  { %p1685_p7 = pnand %p1684_p6, %p1678_p3 }
   0xe   :  { %1688 = shalt.err (!%p1685_p7)
}
   0xf   :  { %s1692_s22 = smov 64   ;;  %s1693_s23 = smov 4  }
  0x10   :  { %22 = dma.hbm_to_vmem [thread:$0]  %s1844_s1, 5120, %s17_s13, [#allocation3], %s1692_s22, %s1692_s22, %s1693_s23  }
  0x11   :  { %1689 = dma.done.wait [#allocation3], 5120  }
  0x12   :  { %1690 = vsyncadd [#allocation3], 4294962176  ;;  %v1467_v0 = vld [vmem:[#allocation2] sm:$0xff]   ;;  %v1468_v1 = vld [vmem:[#allocation2 + $0x8] sm:$0xff]  }
  0x13   :  { %1288 = vmatprep.subr.bf16.mxu0 %v1467_v0  ;;  %v1469_v2 = vld [vmem:[#allocation2 + $0x10] sm:$0xff]   ;;  %v1470_v3 = vld [vmem:[#allocation2 + $0x18] sm:$0xff]   ;;  %v29_v4 = vld [vmem:[%s1843_s0] sm:$0xff] }
  0x14   :  { %1289 = vmatpush3.bf16.msra.mxu0 %v1467_v0  ;;  %v30_v5 = vld [vmem:[%s1843_s0 + $0x8] sm:$0xff]  ;;  %v1471_v7 = vld [vmem:[#allocation2 + $0x20] sm:$0xff]   ;;  %v1477_v11 = vld [vmem:[#allocation2 + $0x50] sm:$0xff]  }
  0x15   :  { %1290 = vmatprep.subr.bf16.mxu0 %v1468_v1  ;;  %v45_v6 = vpack.c.bf16 %v30_v5, %v29_v4  ;;  %v1472_v8 = vld [vmem:[#allocation2 + $0x28] sm:$0xff]   ;;  %v1475_v9 = vld [vmem:[#allocation2 + $0x40] sm:$0xff]   ;;  %v1473_v12 = vld [vmem:[#allocation2 + $0x30] sm:$0xff]  }
  0x16   :  { %v1476_v10 = vld [vmem:[#allocation2 + $0x48] sm:$0xff]   ;;  %1320 = vmatprep.subr.bf16.mxu1 %v1475_v9  ;;  %v1474_v13 = vld [vmem:[#allocation2 + $0x38] sm:$0xff]   ;;  %v31_v14 = vld [vmem:[%s1843_s0 + $0x10] sm:$0xff] }
  0x17   :  { %1304 = vmatprep.mubr.bf16.mxu0 %v45_v6  ;;  %1321 = vmatpush3.bf16.msra.mxu1 %v1475_v9  ;;  %v32_v15 = vld [vmem:[%s1843_s0 + $0x18] sm:$0xff]  ;;  %v33_v16 = vld [vmem:[%s1843_s0 + $0x20] sm:$0xff]  ;;  %v34_v17 = vld [vmem:[%s1843_s0 + $0x28] sm:$0xff] }
  0x18   :  { %1291 = vmatpush3.bf16.msra.mxu0 %v1468_v1  ;;  %1322 = vmatprep.subr.bf16.mxu1 %v1476_v10  ;;  %v46_v18 = vpack.c.bf16 %v32_v15, %v31_v14  ;;  %v47_v19 = vpack.c.bf16 %v34_v17, %v33_v16  ;;  %v35_v20 = vld [vmem:[%s1843_s0 + $0x30] sm:$0xff]  ;;  %v36_v21 = vld [vmem:[%s1843_s0 + $0x38] sm:$0xff]  ;;  %v37_v22 = vld [vmem:[%s1843_s0 + $0x40] sm:$0xff] }
  0x19   :  { %1292 = vmatprep.subr.bf16.mxu0 %v1469_v2  ;;  %v38_v23 = vld [vmem:[%s1843_s0 + $0x48] sm:$0xff]  ;;  %v48_v24 = vpack.c.bf16 %v36_v21, %v35_v20  ;;  %v39_v26 = vld [vmem:[%s1843_s0 + $0x50] sm:$0xff]  ;;  %v40_v27 = vld [vmem:[%s1843_s0 + $0x58] sm:$0xff] }
  0x1a   :  { %v49_v25 = vpack.c.bf16 %v38_v23, %v37_v22  ;;  %v41_v28 = vld [vmem:[%s1843_s0 + $0x60] sm:$0xff]  ;;  %v42_v29 = vld [vmem:[%s1843_s0 + $0x68] sm:$0xff]  ;;  %v50_v30 = vpack.c.bf16 %v40_v27, %v39_v26  ;;  %v43_v32 = vld [vmem:[%s1843_s0 + $0x70] sm:$0xff] }
  0x1b   :  { %1323 = vmatpush3.bf16.msra.mxu1 %v1476_v10  ;;  %v51_v31 = vpack.c.bf16 %v42_v29, %v41_v28  ;;  %v44_v33 = vld [vmem:[%s1843_s0 + $0x78] sm:$0xff]  ;;  %v1479_v36 = vld [vmem:[#allocation2 + $0x60] sm:$0xff]   ;;  %v1480_v37 = vld [vmem:[#allocation2 + $0x68] sm:$0xff]  }
  0x1c   :  { %1293 = vmatpush3.bf16.msra.mxu0 %v1469_v2  ;;  %1324 = vmatprep.subr.bf16.mxu1 %v1477_v11  ;;  %v52_v34 = vpack.c.bf16 %v44_v33, %v43_v32  ;;  %v1478_v35 = vld [vmem:[#allocation2 + $0x58] sm:$0xff]   ;;  %v1481_v38 = vld [vmem:[#allocation2 + $0x70] sm:$0xff]   ;;  %v1483_v40 = vld [vmem:[#allocation2 + $0x80] sm:$0xff]  }
  0x1d   :  { %1294 = vmatprep.subr.bf16.mxu0 %v1470_v3  ;;  %v1482_v39 = vld [vmem:[#allocation2 + $0x78] sm:$0xff]   ;;  %v1484_v41 = vld [vmem:[#allocation2 + $0x88] sm:$0xff]   ;;  %v1485_v42 = vld [vmem:[#allocation2 + $0x90] sm:$0xff]  }
  0x1e   :  { %v1486_v43 = vld [vmem:[#allocation2 + $0x98] sm:$0xff]   ;;  %v1084_v44 = vld [vmem:[%s1845_s2] ss:$0 sm:$0xff] }
  0x1f   :  { %1325 = vmatpush3.bf16.msra.mxu1 %v1477_v11 }
  0x20   :  { %1295 = vmatpush3.bf16.msra.mxu0 %v1470_v3  ;;  %1326 = vmatprep.subr.bf16.mxu1 %v1478_v35 }
  0x21   :  { %1296 = vmatprep.subr.bf16.mxu0 %v1471_v7 }
  0x23   :  { %1327 = vmatpush3.bf16.msra.mxu1 %v1478_v35 }
  0x24   :  { %1297 = vmatpush3.bf16.msra.mxu0 %v1471_v7  ;;  %1328 = vmatprep.subr.bf16.mxu1 %v1479_v36 }
  0x25   :  { %1298 = vmatprep.subr.bf16.mxu0 %v1472_v8 }
  0x27   :  { %1329 = vmatpush3.bf16.msra.mxu1 %v1479_v36 }
  0x28   :  { %1299 = vmatpush3.bf16.msra.mxu0 %v1472_v8  ;;  %1330 = vmatprep.subr.bf16.mxu1 %v1480_v37 }
  0x29   :  { %1300 = vmatprep.subr.bf16.mxu0 %v1473_v12 }
  0x2b   :  { %1331 = vmatpush3.bf16.msra.mxu1 %v1480_v37  ;;  %v1487_v37 = vld [vmem:[#allocation2 + $0xa0] sm:$0xff]  }
  0x2c   :  { %1301 = vmatpush3.bf16.msra.mxu0 %v1473_v12  ;;  %1332 = vmatprep.subr.bf16.mxu1 %v1481_v38 }
  0x2d   :  { %1302 = vmatprep.subr.bf16.mxu0 %v1474_v13 }
  0x2f   :  { %1333 = vmatpush3.bf16.msra.mxu1 %v1481_v38  ;;  %v1488_v38 = vld [vmem:[#allocation2 + $0xa8] sm:$0xff]  }
  0x30   :  { %1303 = vmatpush3.bf16.msra.mxu0 %v1474_v13  ;;  %1334 = vmatprep.subr.bf16.mxu1 %v1482_v39 }
  0x31   :  { %1352 = vmatprep.subr.bf16.mxu0 %v1483_v40 }
  0x33   :  { %1305 = vmatmul.mubr.bf16.vlgmr.msra.gmra.mrb[0].mxu0 %v46_v18  ;;  %1335 = vmatpush3.bf16.msra.mxu1 %v1482_v39  ;;  %v1489_v39 = vld [vmem:[#allocation2 + $0xb0] sm:$0xff]  }
  0x34   :  { %1308 = vmatprep.mubr.bf16.mxu0 %v47_v19  ;;  %1353 = vmatpush3.bf16.msra.mxu0 %v1483_v40  ;;  %v1490_v40 = vld [vmem:[#allocation2 + $0xb8] sm:$0xff]  }
  0x35   :  { %1354 = vmatprep.subr.bf16.mxu0 %v1484_v41 }
  0x38   :  { %1355 = vmatpush3.bf16.msra.mxu0 %v1484_v41  ;;  %v1491_v41 = vld [vmem:[#allocation2 + $0xc0] sm:$0xff]  }
  0x39   :  { %1356 = vmatprep.subr.bf16.mxu0 %v1485_v42  ;;  %1384 = vmatprep.subr.bf16.mxu1 %v1491_v41 }
  0x3b   :  { %1309 = vmatmul.mubr.bf16.gmra.mrb[4].mxu0 %v48_v24 }
  0x3c   :  { %1312 = vmatprep.mubr.bf16.mxu0 %v49_v25  ;;  %1357 = vmatpush3.bf16.msra.mxu0 %v1485_v42  ;;  %v1492_v42 = vld [vmem:[#allocation2 + $0xc8] sm:$0xff]  }
  0x3d   :  { %1358 = vmatprep.subr.bf16.mxu0 %v1486_v43 }
  0x40   :  { %1359 = vmatpush3.bf16.msra.mxu0 %v1486_v43  ;;  %v1493_v43 = vld [vmem:[#allocation2 + $0xd0] sm:$0xff]  }
  0x41   :  { %1360 = vmatprep.subr.bf16.mxu0 %v1487_v37 }
  0x43   :  { %1313 = vmatmul.mubr.bf16.gmra.mrb[8].mxu0 %v50_v30 }
  0x44   :  { %1316 = vmatprep.mubr.bf16.mxu0 %v51_v31  ;;  %1361 = vmatpush3.bf16.msra.mxu0 %v1487_v37 }
  0x45   :  { %1362 = vmatprep.subr.bf16.mxu0 %v1488_v38 }
  0x48   :  { %1363 = vmatpush3.bf16.msra.mxu0 %v1488_v38  ;;  %v1495_v38 = vld [vmem:[#allocation2 + $0xe0] sm:$0xff]  }
  0x49   :  { %1364 = vmatprep.subr.bf16.mxu0 %v1489_v39 }
  0x4b   :  { %1317 = vmatmul.mubr.bf16.gmra.mrb[12].mxu0 %v52_v34 }
  0x4c   :  { %1365 = vmatpush3.bf16.msra.mxu0 %v1489_v39  ;;  %v1496_v39 = vld [vmem:[#allocation2 + $0xe8] sm:$0xff]  }
  0x4d   :  { %1366 = vmatprep.subr.bf16.mxu0 %v1490_v40 }
  0x50   :  { %1367 = vmatpush3.bf16.msra.mxu0 %v1490_v40  ;;  %v1497_v40 = vld [vmem:[#allocation2 + $0xf0] sm:$0xff]  }
 0x106   :  { %v1306_v45 = vpop.f32.mrb[0].mxu0 }
 0x107   :  { %v165_v46 = vadd.f32 %v1306_v45, %v1084_v44  ;;  %v156_v47 = vpop.f32.mrb[1].mxu0  ;;  %v1093_v45 = vld [vmem:[%s1845_s2 + $0x1] ss:$0 sm:$0xff] }
 0x108   :  { %v157_v48 = vadd.f32 %v1084_v44, %v156_v47  ;;  %v1307_v49 = vpop.f32.mrb[2].mxu0 }
 0x109   :  { %1507 = vtanh.f32 %v165_v46  ;;  %v168_v50 = vadd.f32 %v1307_v49, %v1084_v44  ;;  %v159_v51 = vpop.f32.mrb[3].mxu0 }
 0x10a   :  { %1509 = vtanh.f32 %v157_v48  ;;  %v160_v52 = vadd.f32 %v1084_v44, %v159_v51 }
 0x10b   :  { %1511 = vtanh.f32 %v168_v50 }
 0x10c   :  { %1513 = vtanh.f32 %v160_v52 }
 0x10e   :  { %v1310_v53 = vpop.f32.mrb[4].mxu0 }
 0x10f   :  { %v181_v54 = vadd.f32 %v1310_v53, %v1084_v44  ;;  %v172_v55 = vpop.f32.mrb[5].mxu0 }
 0x110   :  { %v173_v56 = vadd.f32 %v1084_v44, %v172_v55  ;;  %v1311_v57 = vpop.f32.mrb[6].mxu0 }
 0x111   :  { %1515 = vtanh.f32 %v181_v54  ;;  %v184_v58 = vadd.f32 %v1311_v57, %v1084_v44  ;;  %v175_v59 = vpop.f32.mrb[7].mxu0 }
 0x112   :  { %1517 = vtanh.f32 %v173_v56  ;;  %v176_v60 = vadd.f32 %v1084_v44, %v175_v59 }
 0x113   :  { %v1508_v61 = vpop.eup %1507  ;;  %1519 = vtanh.f32 %v184_v58 }
 0x114   :  { %v1510_v62 = vpop.eup %1509  ;;  %1521 = vtanh.f32 %v176_v60 }
 0x115   :  { %v1512_v63 = vpop.eup %1511 }
 0x116   :  { %v1514_v0 = vpop.eup %1513  ;;  %v1314_v1 = vpop.f32.mrb[8].mxu0  ;;  %v236_v2 = vpack.c.bf16 %v1512_v63, %v1508_v61 }
 0x117   :  { %v197_v3 = vadd.f32 %v1314_v1, %v1084_v44  ;;  %v188_v4 = vpop.f32.mrb[9].mxu0  ;;  %v235_v5 = vpack.c.bf16 %v1514_v0, %v1510_v62 }
 0x118   :  { %v189_v6 = vadd.f32 %v1084_v44, %v188_v4  ;;  %v1315_v7 = vpop.f32.mrb[10].mxu0 }
 0x119   :  { %1523 = vtanh.f32 %v197_v3  ;;  %v200_v8 = vadd.f32 %v1315_v7, %v1084_v44  ;;  %v191_v9 = vpop.f32.mrb[11].mxu0  ;;  %1336 = vmatprep.mubr.bf16.mxu1 %v235_v5 }
 0x11a   :  { %1525 = vtanh.f32 %v189_v6  ;;  %v192_v10 = vadd.f32 %v1084_v44, %v191_v9  ;;  %1337 = vmatmul.mubr.bf16.vlgmr.msra.gmra.mrb[0].mxu1 %v236_v2 }
 0x11b   :  { %v1516_v11 = vpop.eup %1515  ;;  %1527 = vtanh.f32 %v200_v8  ;;  %1385 = vmatpush3.bf16.msra.mxu1 %v1491_v41  ;;  %v1498_v41 = vld [vmem:[#allocation2 + $0xf8] sm:$0xff]  }
 0x11c   :  { %v1518_v12 = vpop.eup %1517  ;;  %1529 = vtanh.f32 %v192_v10  ;;  %1386 = vmatprep.subr.bf16.mxu1 %v1492_v42 }
 0x11d   :  { %v1520_v13 = vpop.eup %1519 }
 0x11e   :  { %v1522_v14 = vpop.eup %1521  ;;  %v1318_v15 = vpop.f32.mrb[12].mxu0  ;;  %v238_v16 = vpack.c.bf16 %v1520_v13, %v1516_v11 }
 0x11f   :  { %v213_v17 = vadd.f32 %v1318_v15, %v1084_v44  ;;  %v204_v18 = vpop.f32.mrb[13].mxu0  ;;  %v237_v19 = vpack.c.bf16 %v1522_v14, %v1518_v12  ;;  %1387 = vmatpush3.bf16.msra.mxu1 %v1492_v42  ;;  %v1499_v42 = vld [vmem:[#allocation2 + $0x100] sm:$0xff]  }
 0x120   :  { %v205_v20 = vadd.f32 %v1084_v44, %v204_v18  ;;  %v1319_v21 = vpop.f32.mrb[14].mxu0  ;;  %1388 = vmatprep.subr.bf16.mxu1 %v1493_v43  ;;  %1416 = vmatprep.subr.bf16.mxu0 %v1499_v42 }
 0x121   :  { %1531 = vtanh.f32 %v213_v17  ;;  %v216_v22 = vadd.f32 %v1319_v21, %v1084_v44  ;;  %v207_v23 = vpop.f32.mrb[15].mxu0  ;;  %1340 = vmatprep.mubr.bf16.mxu1 %v237_v19 }
 0x122   :  { %1533 = vtanh.f32 %v205_v20  ;;  %v208_v24 = vadd.f32 %v1084_v44, %v207_v23  ;;  %1341 = vmatmul.mubr.bf16.gmra.mrb[4].mxu1 %v238_v16  ;;  %v1494_v44 = vld [vmem:[#allocation2 + $0xd8] sm:$0xff]  }
 0x123   :  { %v1524_v25 = vpop.eup %1523  ;;  %1535 = vtanh.f32 %v216_v22  ;;  %1389 = vmatpush3.bf16.msra.mxu1 %v1493_v43  ;;  %v1780_v43 = vld [vmem:[#allocation2 + $0x108] sm:$0xff]  }
 0x124   :  { %v1526_v26 = vpop.eup %1525  ;;  %1537 = vtanh.f32 %v208_v24  ;;  %1390 = vmatprep.subr.bf16.mxu1 %v1494_v44 }
 0x125   :  { %v1528_v27 = vpop.eup %1527 }
 0x126   :  { %v1530_v28 = vpop.eup %1529  ;;  %v240_v29 = vpack.c.bf16 %v1528_v27, %v1524_v25 }
 0x127   :  { %v239_v30 = vpack.c.bf16 %v1530_v28, %v1526_v26  ;;  %1391 = vmatpush3.bf16.msra.mxu1 %v1494_v44  ;;  %v1783_v44 = vld [vmem:[#allocation2 + $0x110] sm:$0xff]  }
 0x128   :  { %1392 = vmatprep.subr.bf16.mxu1 %v1495_v38 }
 0x129   :  { %1344 = vmatprep.mubr.bf16.mxu1 %v239_v30 }
 0x12a   :  { %1345 = vmatmul.mubr.bf16.gmra.mrb[8].mxu1 %v240_v29 }
 0x12b   :  { %v1532_v31 = vpop.eup %1531  ;;  %1393 = vmatpush3.bf16.msra.mxu1 %v1495_v38  ;;  %v1502_v38 = vld [vmem:[#allocation2 + $0x118] sm:$0xff]  }
 0x12c   :  { %v1534_v32 = vpop.eup %1533  ;;  %1394 = vmatprep.subr.bf16.mxu1 %v1496_v39 }
 0x12d   :  { %v1536_v33 = vpop.eup %1535 }
 0x12e   :  { %v1538_v34 = vpop.eup %1537  ;;  %v242_v35 = vpack.c.bf16 %v1536_v33, %v1532_v31 }
 0x12f   :  { %v241_v36 = vpack.c.bf16 %v1538_v34, %v1534_v32  ;;  %1395 = vmatpush3.bf16.msra.mxu1 %v1496_v39  ;;  %v1503_v39 = vld [vmem:[#allocation2 + $0x120] sm:$0xff]  }
 0x130   :  { %1396 = vmatprep.subr.bf16.mxu1 %v1497_v40 }
 0x131   :  { %1348 = vmatprep.mubr.bf16.mxu1 %v241_v36 }
 0x132   :  { %1349 = vmatmul.mubr.bf16.gmra.mrb[12].mxu1 %v242_v35 }
 0x133   :  { %1397 = vmatpush3.bf16.msra.mxu1 %v1497_v40  ;;  %v1504_v40 = vld [vmem:[#allocation2 + $0x128] sm:$0xff]  }
 0x134   :  { %1398 = vmatprep.subr.bf16.mxu1 %v1498_v41 }
 0x137   :  { %1399 = vmatpush3.bf16.msra.mxu1 %v1498_v41  ;;  %v1505_v41 = vld [vmem:[#allocation2 + $0x130] sm:$0xff]  }
 0x138   :  { %1448 = vmatprep.subr.bf16.mxu1 %v1499_v42 }
 0x1ed   :  { %v1338_v46 = vpop.f32.mrb[0].mxu1 }
 0x1ee   :  { %v356_v47 = vadd.f32 %v1338_v46, %v1093_v45  ;;  %v347_v48 = vpop.f32.mrb[1].mxu1 }
 0x1ef   :  { %v348_v49 = vadd.f32 %v1093_v45, %v347_v48  ;;  %v1339_v50 = vpop.f32.mrb[2].mxu1 }
 0x1f0   :  { %1539 = vtanh.f32 %v356_v47  ;;  %v359_v51 = vadd.f32 %v1339_v50, %v1093_v45  ;;  %v350_v52 = vpop.f32.mrb[3].mxu1 }
 0x1f1   :  { %1541 = vtanh.f32 %v348_v49  ;;  %v351_v53 = vadd.f32 %v1093_v45, %v350_v52 }
 0x1f2   :  { %1543 = vtanh.f32 %v359_v51 }
 0x1f3   :  { %1545 = vtanh.f32 %v351_v53 }
 0x1f5   :  { %v1342_v54 = vpop.f32.mrb[4].mxu1 }
 0x1f6   :  { %v372_v55 = vadd.f32 %v1342_v54, %v1093_v45  ;;  %v363_v56 = vpop.f32.mrb[5].mxu1 }
 0x1f7   :  { %v364_v57 = vadd.f32 %v1093_v45, %v363_v56  ;;  %v1343_v58 = vpop.f32.mrb[6].mxu1 }
 0x1f8   :  { %1547 = vtanh.f32 %v372_v55  ;;  %v375_v59 = vadd.f32 %v1343_v58, %v1093_v45  ;;  %v366_v60 = vpop.f32.mrb[7].mxu1 }
 0x1f9   :  { %1549 = vtanh.f32 %v364_v57  ;;  %v367_v61 = vadd.f32 %v1093_v45, %v366_v60 }
 0x1fa   :  { %v1540_v62 = vpop.eup %1539  ;;  %1551 = vtanh.f32 %v375_v59 }
 0x1fb   :  { %v1542_v63 = vpop.eup %1541  ;;  %1553 = vtanh.f32 %v367_v61 }
 0x1fc   :  { %v1544_v0 = vpop.eup %1543 }
 0x1fd   :  { %v1546_v1 = vpop.eup %1545  ;;  %v1346_v2 = vpop.f32.mrb[8].mxu1  ;;  %v427_v3 = vpack.c.bf16 %v1544_v0, %v1540_v62 }
 0x1fe   :  { %v388_v4 = vadd.f32 %v1346_v2, %v1093_v45  ;;  %v379_v5 = vpop.f32.mrb[9].mxu1  ;;  %v426_v6 = vpack.c.bf16 %v1546_v1, %v1542_v63 }
 0x1ff   :  { %v380_v7 = vadd.f32 %v1093_v45, %v379_v5  ;;  %v1347_v8 = vpop.f32.mrb[10].mxu1 }
 0x200   :  { %1555 = vtanh.f32 %v388_v4  ;;  %v391_v9 = vadd.f32 %v1347_v8, %v1093_v45  ;;  %v382_v10 = vpop.f32.mrb[11].mxu1  ;;  %1368 = vmatprep.mubr.bf16.mxu0 %v426_v6 }
 0x201   :  { %1557 = vtanh.f32 %v380_v7  ;;  %v383_v11 = vadd.f32 %v1093_v45, %v382_v10  ;;  %1369 = vmatmul.mubr.bf16.vlgmr.msra.gmra.mrb[16].mxu0 %v427_v3 }
 0x202   :  { %v1548_v12 = vpop.eup %1547  ;;  %1559 = vtanh.f32 %v391_v9  ;;  %1417 = vmatpush3.bf16.msra.mxu0 %v1499_v42 }
 0x203   :  { %v1550_v13 = vpop.eup %1549  ;;  %1561 = vtanh.f32 %v383_v11  ;;  %1418 = vmatprep.subr.bf16.mxu0 %v1780_v43 }
 0x204   :  { %v1552_v14 = vpop.eup %1551 }
 0x205   :  { %v1554_v15 = vpop.eup %1553  ;;  %v1350_v16 = vpop.f32.mrb[12].mxu1  ;;  %v429_v17 = vpack.c.bf16 %v1552_v14, %v1548_v12 }
 0x206   :  { %v404_v18 = vadd.f32 %v1350_v16, %v1093_v45  ;;  %v395_v19 = vpop.f32.mrb[13].mxu1  ;;  %v428_v20 = vpack.c.bf16 %v1554_v15, %v1550_v13  ;;  %1419 = vmatpush3.bf16.msra.mxu0 %v1780_v43 }
 0x207   :  { %v396_v21 = vadd.f32 %v1093_v45, %v395_v19  ;;  %v1351_v22 = vpop.f32.mrb[14].mxu1  ;;  %1420 = vmatprep.subr.bf16.mxu0 %v1783_v44 }
 0x208   :  { %1563 = vtanh.f32 %v404_v18  ;;  %v407_v23 = vadd.f32 %v1351_v22, %v1093_v45  ;;  %v398_v24 = vpop.f32.mrb[15].mxu1  ;;  %1372 = vmatprep.mubr.bf16.mxu0 %v428_v20 }
 0x209   :  { %1565 = vtanh.f32 %v396_v21  ;;  %v399_v25 = vadd.f32 %v1093_v45, %v398_v24  ;;  %1373 = vmatmul.mubr.bf16.gmra.mrb[20].mxu0 %v429_v17  ;;  %v1791_v45 = vld [vmem:[%s1845_s2 + $0x2] ss:$0 sm:$0xff] }
 0x20a   :  { %v1556_v26 = vpop.eup %1555  ;;  %1567 = vtanh.f32 %v407_v23  ;;  %1421 = vmatpush3.bf16.msra.mxu0 %v1783_v44 }
 0x20b   :  { %v1558_v27 = vpop.eup %1557  ;;  %1569 = vtanh.f32 %v399_v25  ;;  %1422 = vmatprep.subr.bf16.mxu0 %v1502_v38 }
 0x20c   :  { %v1560_v28 = vpop.eup %1559 }
 0x20d   :  { %v1562_v29 = vpop.eup %1561  ;;  %v431_v30 = vpack.c.bf16 %v1560_v28, %v1556_v26 }
 0x20e   :  { %v430_v31 = vpack.c.bf16 %v1562_v29, %v1558_v27  ;;  %1423 = vmatpush3.bf16.msra.mxu0 %v1502_v38 }
 0x20f   :  { %1424 = vmatprep.subr.bf16.mxu0 %v1503_v39 }
 0x210   :  { %1376 = vmatprep.mubr.bf16.mxu0 %v430_v31 }
 0x211   :  { %1377 = vmatmul.mubr.bf16.gmra.mrb[24].mxu0 %v431_v30 }
 0x212   :  { %v1564_v32 = vpop.eup %1563  ;;  %1425 = vmatpush3.bf16.msra.mxu0 %v1503_v39 }
 0x213   :  { %v1566_v33 = vpop.eup %1565  ;;  %1426 = vmatprep.subr.bf16.mxu0 %v1504_v40 }
 0x214   :  { %v1568_v34 = vpop.eup %1567 }
 0x215   :  { %v1570_v35 = vpop.eup %1569  ;;  %v433_v36 = vpack.c.bf16 %v1568_v34, %v1564_v32 }
 0x216   :  { %v432_v37 = vpack.c.bf16 %v1570_v35, %v1566_v33  ;;  %1427 = vmatpush3.bf16.msra.mxu0 %v1504_v40 }
 0x217   :  { %1428 = vmatprep.subr.bf16.mxu0 %v1505_v41 }
 0x218   :  { %1380 = vmatprep.mubr.bf16.mxu0 %v432_v37 }
 0x219   :  { %1381 = vmatmul.mubr.bf16.gmra.mrb[28].mxu0 %v433_v36 }
 0x21a   :  { %1429 = vmatpush3.bf16.msra.mxu0 %v1505_v41 }
 0x2d4   :  { %v1370_v46 = vpop.f32.mrb[16].mxu0 }
 0x2d5   :  { %v547_v47 = vadd.f32 %v1370_v46, %v1791_v45  ;;  %v538_v48 = vpop.f32.mrb[17].mxu0 }
 0x2d6   :  { %v539_v49 = vadd.f32 %v1791_v45, %v538_v48  ;;  %v1371_v50 = vpop.f32.mrb[18].mxu0 }
 0x2d7   :  { %1571 = vtanh.f32 %v547_v47  ;;  %v550_v51 = vadd.f32 %v1371_v50, %v1791_v45  ;;  %v541_v52 = vpop.f32.mrb[19].mxu0 }
 0x2d8   :  { %1573 = vtanh.f32 %v539_v49  ;;  %v542_v53 = vadd.f32 %v1791_v45, %v541_v52 }
 0x2d9   :  { %1575 = vtanh.f32 %v550_v51 }
 0x2da   :  { %1577 = vtanh.f32 %v542_v53 }
 0x2dc   :  { %v1374_v54 = vpop.f32.mrb[20].mxu0 }
 0x2dd   :  { %v563_v55 = vadd.f32 %v1374_v54, %v1791_v45  ;;  %v554_v56 = vpop.f32.mrb[21].mxu0 }
 0x2de   :  { %v555_v57 = vadd.f32 %v1791_v45, %v554_v56  ;;  %v1375_v58 = vpop.f32.mrb[22].mxu0 }
 0x2df   :  { %1579 = vtanh.f32 %v563_v55  ;;  %v566_v59 = vadd.f32 %v1375_v58, %v1791_v45  ;;  %v557_v60 = vpop.f32.mrb[23].mxu0 }
 0x2e0   :  { %1581 = vtanh.f32 %v555_v57  ;;  %v558_v61 = vadd.f32 %v1791_v45, %v557_v60 }
 0x2e1   :  { %v1572_v62 = vpop.eup %1571  ;;  %1583 = vtanh.f32 %v566_v59 }
 0x2e2   :  { %v1574_v63 = vpop.eup %1573  ;;  %1585 = vtanh.f32 %v558_v61 }
 0x2e3   :  { %v1576_v0 = vpop.eup %1575 }
 0x2e4   :  { %v1578_v1 = vpop.eup %1577  ;;  %v1378_v2 = vpop.f32.mrb[24].mxu0  ;;  %v618_v3 = vpack.c.bf16 %v1576_v0, %v1572_v62 }
 0x2e5   :  { %v579_v4 = vadd.f32 %v1378_v2, %v1791_v45  ;;  %v570_v5 = vpop.f32.mrb[25].mxu0  ;;  %v617_v6 = vpack.c.bf16 %v1578_v1, %v1574_v63 }
 0x2e6   :  { %v571_v7 = vadd.f32 %v1791_v45, %v570_v5  ;;  %v1379_v8 = vpop.f32.mrb[26].mxu0 }
 0x2e7   :  { %1587 = vtanh.f32 %v579_v4  ;;  %v582_v9 = vadd.f32 %v1379_v8, %v1791_v45  ;;  %v573_v10 = vpop.f32.mrb[27].mxu0  ;;  %1400 = vmatprep.mubr.bf16.mxu1 %v617_v6 }
 0x2e8   :  { %1589 = vtanh.f32 %v571_v7  ;;  %v574_v11 = vadd.f32 %v1791_v45, %v573_v10  ;;  %1401 = vmatmul.mubr.bf16.vlgmr.msra.gmra.mrb[16].mxu1 %v618_v3 }
 0x2e9   :  { %v1580_v12 = vpop.eup %1579  ;;  %1591 = vtanh.f32 %v582_v9  ;;  %1456 = vmatpush3.bf16.msra.mxu1 %v1499_v42  ;;  %v1506_v42 = vld [vmem:[#allocation2 + $0x138] sm:$0xff]  }
 0x2ea   :  { %v1582_v13 = vpop.eup %1581  ;;  %1593 = vtanh.f32 %v574_v11  ;;  %1449 = vmatprep.subr.bf16.mxu1 %v1780_v43  ;;  %1430 = vmatprep.subr.bf16.mxu0 %v1506_v42 }
 0x2eb   :  { %v1584_v14 = vpop.eup %1583  ;;  %1431 = vmatpush3.bf16.msra.mxu0 %v1506_v42 }
 0x2ec   :  { %v1586_v15 = vpop.eup %1585  ;;  %v1382_v16 = vpop.f32.mrb[28].mxu0  ;;  %v620_v17 = vpack.c.bf16 %v1584_v14, %v1580_v12 }
 0x2ed   :  { %v595_v18 = vadd.f32 %v1382_v16, %v1791_v45  ;;  %v586_v19 = vpop.f32.mrb[29].mxu0  ;;  %v619_v20 = vpack.c.bf16 %v1586_v15, %v1582_v13  ;;  %1457 = vmatpush3.bf16.msra.mxu1 %v1780_v43  ;;  %v1111_v43 = vld [vmem:[%s1845_s2 + $0x3] ss:$0 sm:$0xff] }
 0x2ee   :  { %v587_v21 = vadd.f32 %v1791_v45, %v586_v19  ;;  %v1383_v22 = vpop.f32.mrb[30].mxu0  ;;  %1450 = vmatprep.subr.bf16.mxu1 %v1783_v44 }
 0x2ef   :  { %1595 = vtanh.f32 %v595_v18  ;;  %v598_v23 = vadd.f32 %v1383_v22, %v1791_v45  ;;  %v589_v24 = vpop.f32.mrb[31].mxu0  ;;  %1404 = vmatprep.mubr.bf16.mxu1 %v619_v20 }
 0x2f0   :  { %1597 = vtanh.f32 %v587_v21  ;;  %v590_v25 = vadd.f32 %v1791_v45, %v589_v24  ;;  %1405 = vmatmul.mubr.bf16.gmra.mrb[20].mxu1 %v620_v17 }
 0x2f1   :  { %v1588_v26 = vpop.eup %1587  ;;  %1599 = vtanh.f32 %v598_v23  ;;  %1458 = vmatpush3.bf16.msra.mxu1 %v1783_v44 }
 0x2f2   :  { %v1590_v27 = vpop.eup %1589  ;;  %1601 = vtanh.f32 %v590_v25  ;;  %1451 = vmatprep.subr.bf16.mxu1 %v1502_v38 }
 0x2f3   :  { %v1592_v28 = vpop.eup %1591 }
 0x2f4   :  { %v1594_v29 = vpop.eup %1593  ;;  %v622_v30 = vpack.c.bf16 %v1592_v28, %v1588_v26 }
 0x2f5   :  { %v621_v31 = vpack.c.bf16 %v1594_v29, %v1590_v27  ;;  %1459 = vmatpush3.bf16.msra.mxu1 %v1502_v38 }
 0x2f6   :  { %1452 = vmatprep.subr.bf16.mxu1 %v1503_v39 }
 0x2f7   :  { %1408 = vmatprep.mubr.bf16.mxu1 %v621_v31 }
 0x2f8   :  { %1409 = vmatmul.mubr.bf16.gmra.mrb[24].mxu1 %v622_v30 }
 0x2f9   :  { %v1596_v32 = vpop.eup %1595  ;;  %1460 = vmatpush3.bf16.msra.mxu1 %v1503_v39 }
 0x2fa   :  { %v1598_v33 = vpop.eup %1597  ;;  %1453 = vmatprep.subr.bf16.mxu1 %v1504_v40 }
 0x2fb   :  { %v1600_v34 = vpop.eup %1599 }
 0x2fc   :  { %v1602_v35 = vpop.eup %1601  ;;  %v624_v36 = vpack.c.bf16 %v1600_v34, %v1596_v32 }
 0x2fd   :  { %v623_v37 = vpack.c.bf16 %v1602_v35, %v1598_v33  ;;  %1461 = vmatpush3.bf16.msra.mxu1 %v1504_v40 }
 0x2fe   :  { %1454 = vmatprep.subr.bf16.mxu1 %v1505_v41 }
 0x2ff   :  { %1412 = vmatprep.mubr.bf16.mxu1 %v623_v37 }
 0x300   :  { %1413 = vmatmul.mubr.bf16.gmra.mrb[28].mxu1 %v624_v36  ;;  %v1120_v36 = vld [vmem:[%s1845_s2 + $0x4] ss:$0 sm:$0xff] }
 0x301   :  { %1462 = vmatpush3.bf16.msra.mxu1 %v1505_v41 }
 0x302   :  { %1455 = vmatprep.subr.bf16.mxu1 %v1506_v42 }
 0x305   :  { %1463 = vmatpush3.bf16.msra.mxu1 %v1506_v42 }
 0x3bb   :  { %v1402_v44 = vpop.f32.mrb[16].mxu1 }
 0x3bc   :  { %v738_v45 = vadd.f32 %v1402_v44, %v1111_v43  ;;  %v729_v46 = vpop.f32.mrb[17].mxu1 }
 0x3bd   :  { %v730_v47 = vadd.f32 %v1111_v43, %v729_v46  ;;  %v1403_v48 = vpop.f32.mrb[18].mxu1 }
 0x3be   :  { %1603 = vtanh.f32 %v738_v45  ;;  %v741_v49 = vadd.f32 %v1403_v48, %v1111_v43  ;;  %v732_v50 = vpop.f32.mrb[19].mxu1 }
 0x3bf   :  { %1605 = vtanh.f32 %v730_v47  ;;  %v733_v51 = vadd.f32 %v1111_v43, %v732_v50 }
 0x3c0   :  { %1607 = vtanh.f32 %v741_v49 }
 0x3c1   :  { %1609 = vtanh.f32 %v733_v51 }
 0x3c3   :  { %v1406_v52 = vpop.f32.mrb[20].mxu1 }
 0x3c4   :  { %v754_v53 = vadd.f32 %v1406_v52, %v1111_v43  ;;  %v745_v54 = vpop.f32.mrb[21].mxu1 }
 0x3c5   :  { %v746_v55 = vadd.f32 %v1111_v43, %v745_v54  ;;  %v1407_v56 = vpop.f32.mrb[22].mxu1 }
 0x3c6   :  { %1611 = vtanh.f32 %v754_v53  ;;  %v757_v57 = vadd.f32 %v1407_v56, %v1111_v43  ;;  %v748_v58 = vpop.f32.mrb[23].mxu1 }
 0x3c7   :  { %1613 = vtanh.f32 %v746_v55  ;;  %v749_v59 = vadd.f32 %v1111_v43, %v748_v58 }
 0x3c8   :  { %v1604_v60 = vpop.eup %1603  ;;  %1615 = vtanh.f32 %v757_v57 }
 0x3c9   :  { %v1606_v61 = vpop.eup %1605  ;;  %1617 = vtanh.f32 %v749_v59 }
 0x3ca   :  { %v1608_v62 = vpop.eup %1607 }
 0x3cb   :  { %v1610_v63 = vpop.eup %1609  ;;  %v1410_v0 = vpop.f32.mrb[24].mxu1  ;;  %v809_v1 = vpack.c.bf16 %v1608_v62, %v1604_v60 }
 0x3cc   :  { %v770_v2 = vadd.f32 %v1410_v0, %v1111_v43  ;;  %v761_v3 = vpop.f32.mrb[25].mxu1  ;;  %v808_v4 = vpack.c.bf16 %v1610_v63, %v1606_v61 }
 0x3cd   :  { %v762_v5 = vadd.f32 %v1111_v43, %v761_v3  ;;  %v1411_v6 = vpop.f32.mrb[26].mxu1 }
 0x3ce   :  { %1619 = vtanh.f32 %v770_v2  ;;  %v773_v7 = vadd.f32 %v1411_v6, %v1111_v43  ;;  %v764_v8 = vpop.f32.mrb[27].mxu1  ;;  %1432 = vmatprep.mubr.bf16.mxu0 %v808_v4 }
 0x3cf   :  { %1621 = vtanh.f32 %v762_v5  ;;  %v765_v9 = vadd.f32 %v1111_v43, %v764_v8  ;;  %1433 = vmatmul.mubr.bf16.vlgmr.msra.gmra.mrb[32].mxu0 %v809_v1 }
 0x3d0   :  { %v1612_v10 = vpop.eup %1611  ;;  %1623 = vtanh.f32 %v773_v7 }
 0x3d1   :  { %v1614_v11 = vpop.eup %1613  ;;  %1625 = vtanh.f32 %v765_v9 }
 0x3d2   :  { %v1616_v12 = vpop.eup %1615 }
 0x3d3   :  { %v1618_v13 = vpop.eup %1617  ;;  %v1414_v14 = vpop.f32.mrb[28].mxu1  ;;  %v811_v15 = vpack.c.bf16 %v1616_v12, %v1612_v10 }
 0x3d4   :  { %v786_v16 = vadd.f32 %v1414_v14, %v1111_v43  ;;  %v777_v17 = vpop.f32.mrb[29].mxu1  ;;  %v810_v18 = vpack.c.bf16 %v1618_v13, %v1614_v11 }
 0x3d5   :  { %v778_v19 = vadd.f32 %v1111_v43, %v777_v17  ;;  %v1415_v20 = vpop.f32.mrb[30].mxu1 }
 0x3d6   :  { %1627 = vtanh.f32 %v786_v16  ;;  %v789_v21 = vadd.f32 %v1415_v20, %v1111_v43  ;;  %v780_v22 = vpop.f32.mrb[31].mxu1  ;;  %1436 = vmatprep.mubr.bf16.mxu0 %v810_v18 }
 0x3d7   :  { %1629 = vtanh.f32 %v778_v19  ;;  %v781_v23 = vadd.f32 %v1111_v43, %v780_v22  ;;  %1437 = vmatmul.mubr.bf16.gmra.mrb[36].mxu0 %v811_v15 }
 0x3d8   :  { %v1620_v24 = vpop.eup %1619  ;;  %1631 = vtanh.f32 %v789_v21 }
 0x3d9   :  { %v1622_v25 = vpop.eup %1621  ;;  %1633 = vtanh.f32 %v781_v23 }
 0x3da   :  { %v1624_v26 = vpop.eup %1623 }
 0x3db   :  { %v1626_v27 = vpop.eup %1625  ;;  %v813_v28 = vpack.c.bf16 %v1624_v26, %v1620_v24 }
 0x3dc   :  { %v812_v29 = vpack.c.bf16 %v1626_v27, %v1622_v25 }
 0x3de   :  { %1440 = vmatprep.mubr.bf16.mxu1 %v812_v29 }
 0x3df   :  { %1441 = vmatmul.mubr.bf16.vlgmr.msra.gmra.mrb[32].mxu1 %v813_v28 }
 0x3e0   :  { %v1628_v30 = vpop.eup %1627 }
 0x3e1   :  { %v1630_v31 = vpop.eup %1629 }
 0x3e2   :  { %v1632_v32 = vpop.eup %1631 }
 0x3e3   :  { %v1634_v33 = vpop.eup %1633  ;;  %v815_v34 = vpack.c.bf16 %v1632_v32, %v1628_v30 }
 0x3e4   :  { %v814_v35 = vpack.c.bf16 %v1634_v33, %v1630_v31 }
 0x3e6   :  { %1444 = vmatprep.mubr.bf16.mxu1 %v814_v35 }
 0x3e7   :  { %1445 = vmatmul.mubr.bf16.gmra.mrb[36].mxu1 %v815_v34 }
 0x4a2   :  { %v1434_v37 = vpop.f32.mrb[32].mxu0 }
 0x4a3   :  { %v929_v38 = vadd.f32 %v1434_v37, %v1120_v36  ;;  %v920_v39 = vpop.f32.mrb[33].mxu0 }
 0x4a4   :  { %v921_v40 = vadd.f32 %v1120_v36, %v920_v39  ;;  %v1435_v41 = vpop.f32.mrb[34].mxu0 }
 0x4a5   :  { %1635 = vtanh.f32 %v929_v38  ;;  %v932_v42 = vadd.f32 %v1435_v41, %v1120_v36  ;;  %v923_v43 = vpop.f32.mrb[35].mxu0 }
 0x4a6   :  { %1637 = vtanh.f32 %v921_v40  ;;  %v924_v44 = vadd.f32 %v1120_v36, %v923_v43 }
 0x4a7   :  { %1639 = vtanh.f32 %v932_v42 }
 0x4a8   :  { %1641 = vtanh.f32 %v924_v44 }
 0x4aa   :  { %v1438_v45 = vpop.f32.mrb[36].mxu0 }
 0x4ab   :  { %v945_v46 = vadd.f32 %v1438_v45, %v1120_v36  ;;  %v936_v47 = vpop.f32.mrb[37].mxu0 }
 0x4ac   :  { %v937_v48 = vadd.f32 %v1120_v36, %v936_v47  ;;  %v1439_v49 = vpop.f32.mrb[38].mxu0 }
 0x4ad   :  { %1643 = vtanh.f32 %v945_v46  ;;  %v948_v50 = vadd.f32 %v1439_v49, %v1120_v36  ;;  %v939_v51 = vpop.f32.mrb[39].mxu0 }
 0x4ae   :  { %1645 = vtanh.f32 %v937_v48  ;;  %v940_v52 = vadd.f32 %v1120_v36, %v939_v51 }
 0x4af   :  { %v1636_v53 = vpop.eup %1635  ;;  %1647 = vtanh.f32 %v948_v50 }
 0x4b0   :  { %v1638_v54 = vpop.eup %1637  ;;  %1649 = vtanh.f32 %v940_v52 }
 0x4b1   :  { %v1640_v55 = vpop.eup %1639 }
 0x4b2   :  { %v1642_v56 = vpop.eup %1641  ;;  %v1169_v57 = vpack.c.bf16 %v1640_v55, %v1636_v53  ;;  %v1442_v58 = vpop.f32.mrb[32].mxu1 }
 0x4b3   :  { %v1164_v59 = vpack.c.bf16 %v1642_v56, %v1638_v54  ;;  %v961_v60 = vadd.f32 %v1442_v58, %v1120_v36  ;;  %v952_v61 = vpop.f32.mrb[33].mxu1 }
 0x4b4   :  { %1201 = vst [vmem:[%s1846_s3 + $0x8] sm:$0xff] %v1169_v57   ;;  %v953_v62 = vadd.f32 %v1120_v36, %v952_v61  ;;  %v1443_v63 = vpop.f32.mrb[34].mxu1 }
 0x4b5   :  { %1165 = vst [vmem:[%s1846_s3] sm:$0xff] %v1164_v59   ;;  %1651 = vtanh.f32 %v961_v60  ;;  %v964_v0 = vadd.f32 %v1443_v63, %v1120_v36  ;;  %v955_v1 = vpop.f32.mrb[35].mxu1 }
 0x4b6   :  { %1653 = vtanh.f32 %v953_v62  ;;  %v956_v2 = vadd.f32 %v1120_v36, %v955_v1 }
 0x4b7   :  { %v1644_v3 = vpop.eup %1643  ;;  %1655 = vtanh.f32 %v964_v0 }
 0x4b8   :  { %v1646_v4 = vpop.eup %1645  ;;  %1657 = vtanh.f32 %v956_v2 }
 0x4b9   :  { %v1648_v5 = vpop.eup %1647 }
 0x4ba   :  { %v1650_v6 = vpop.eup %1649  ;;  %v1179_v7 = vpack.c.bf16 %v1648_v5, %v1644_v3  ;;  %v1446_v8 = vpop.f32.mrb[36].mxu1 }
 0x4bb   :  { %v1174_v9 = vpack.c.bf16 %v1650_v6, %v1646_v4  ;;  %v977_v10 = vadd.f32 %v1446_v8, %v1120_v36  ;;  %v968_v11 = vpop.f32.mrb[37].mxu1 }
 0x4bc   :  { %1203 = vst [vmem:[%s1846_s3 + $0x18] sm:$0xff] %v1179_v7   ;;  %v969_v12 = vadd.f32 %v1120_v36, %v968_v11  ;;  %v1447_v13 = vpop.f32.mrb[38].mxu1 }
 0x4bd   :  { %1202 = vst [vmem:[%s1846_s3 + $0x10] sm:$0xff] %v1174_v9   ;;  %1659 = vtanh.f32 %v977_v10  ;;  %v980_v14 = vadd.f32 %v1447_v13, %v1120_v36  ;;  %v971_v15 = vpop.f32.mrb[39].mxu1 }
 0x4be   :  { %1661 = vtanh.f32 %v969_v12  ;;  %v972_v16 = vadd.f32 %v1120_v36, %v971_v15 }
 0x4bf   :  { %v1652_v17 = vpop.eup %1651  ;;  %1663 = vtanh.f32 %v980_v14 }
 0x4c0   :  { %v1654_v18 = vpop.eup %1653  ;;  %1665 = vtanh.f32 %v972_v16 }
 0x4c1   :  { %v1656_v19 = vpop.eup %1655 }
 0x4c2   :  { %v1658_v20 = vpop.eup %1657  ;;  %v1189_v21 = vpack.c.bf16 %v1656_v19, %v1652_v17 }
 0x4c3   :  { %v1184_v22 = vpack.c.bf16 %v1658_v20, %v1654_v18 }
 0x4c4   :  { %1205 = vst [vmem:[%s1846_s3 + $0x28] sm:$0xff] %v1189_v21  }
 0x4c5   :  { %1204 = vst [vmem:[%s1846_s3 + $0x20] sm:$0xff] %v1184_v22  }
 0x4c7   :  { %v1660_v23 = vpop.eup %1659 }
 0x4c8   :  { %v1662_v24 = vpop.eup %1661 }
 0x4c9   :  { %v1664_v25 = vpop.eup %1663 }
 0x4ca   :  { %v1666_v26 = vpop.eup %1665  ;;  %v1199_v27 = vpack.c.bf16 %v1664_v25, %v1660_v23 }
 0x4cb   :  { %v1194_v28 = vpack.c.bf16 %v1666_v26, %v1662_v24 }
 0x4cc   :  { %1207 = vst [vmem:[%s1846_s3 + $0x38] sm:$0xff] %v1199_v27  }
 0x4cd   :  { %1206 = vst [vmem:[%s1846_s3 + $0x30] sm:$0xff] %v1194_v28  }
 0x4ce   :  { %1083 = vsyncpa [#allocation3], 1 }

// kernel: deeponet_forward.3
= control target key start
LH: loop header
LB: loop body
LE: loop exit
PB: predicated region body
PF: predicated region fallthrough
CT: control target
= control target key end

     0   :  { %v884_v0 = vmov 0.0   ;;  %vm885_vm0 = vmmov 0   ;;  %s1097_s1 = inlined_call_operand.vmem [shape: bf16[5,128,128], index: 1, kind: input, shape index: {}]   ;;  %s1098_s0 = inlined_call_operand.vmem [shape: f32[8,128], index: 0, kind: input, shape index: {}]   ;;  %s1099_s2 = inlined_call_operand.vmem [shape: f32[5,128], index: 2, kind: input, shape index: {}]   ;;  %s1100_s3 = inlined_call_operand.vmem [shape: bf16[8,128], index: 3, kind: output, shape index: {}]  }
   0x1   :  { %734 = vmatprep.subr.bf16.mxu0 %v884_v0  ;;  %v836_v1 = vld [vmem:[%s1097_s1] sm:$0xff]   ;;  %750 = vmatprep.mubr.msk.bf16.mxu0 %vm885_vm0, %v884_v0  ;;  %v837_v2 = vld [vmem:[%s1097_s1 + $0x8] sm:$0xff]   ;;  %v838_v3 = vld [vmem:[%s1097_s1 + $0x10] sm:$0xff]  }
   0x2   :  { %754 = vmatprep.subr.bf16.mxu1 %v884_v0  ;;  %770 = vmatprep.mubr.msk.bf16.mxu1 %vm885_vm0, %v884_v0  ;;  %v844_v4 = vld [vmem:[%s1097_s1 + $0x40] sm:$0xff]   ;;  %v839_v5 = vld [vmem:[%s1097_s1 + $0x18] sm:$0xff]   ;;  %v845_v6 = vld [vmem:[%s1097_s1 + $0x48] sm:$0xff]  }
   0x3   :  { %735 = vmatpush3.bf16.msra.mxu0 %v836_v1  ;;  %755 = vmatpush3.bf16.msra.mxu1 %v844_v4  ;;  %v840_v7 = vld [vmem:[%s1097_s1 + $0x20] sm:$0xff]   ;;  %v846_v8 = vld [vmem:[%s1097_s1 + $0x50] sm:$0xff]   ;;  %v841_v9 = vld [vmem:[%s1097_s1 + $0x28] sm:$0xff]  }
   0x4   :  { %736 = vmatprep.subr.bf16.mxu0 %v884_v0  ;;  %756 = vmatprep.subr.bf16.mxu1 %v884_v0  ;;  %v847_v10 = vld [vmem:[%s1097_s1 + $0x58] sm:$0xff]   ;;  %v842_v11 = vld [vmem:[%s1097_s1 + $0x30] sm:$0xff]   ;;  %v15_v13 = vld [vmem:[%s1098_s0] sm:$0xff] }
   0x5   :  { %v843_v12 = vld [vmem:[%s1097_s1 + $0x38] sm:$0xff]   ;;  %v16_v14 = vpack.c.bf16 %v15_v13, %v15_v13  ;;  %v848_v15 = vld [vmem:[%s1097_s1 + $0x60] sm:$0xff]   ;;  %v849_v16 = vld [vmem:[%s1097_s1 + $0x68] sm:$0xff]  }
   0x6   :  { %v850_v17 = vld [vmem:[%s1097_s1 + $0x70] sm:$0xff]   ;;  %v851_v18 = vld [vmem:[%s1097_s1 + $0x78] sm:$0xff]   ;;  %v852_v19 = vld [vmem:[%s1097_s1 + $0x80] sm:$0xff]  }
   0x7   :  { %737 = vmatpush3.bf16.msra.mxu0 %v837_v2  ;;  %757 = vmatpush3.bf16.msra.mxu1 %v845_v6  ;;  %v853_v20 = vld [vmem:[%s1097_s1 + $0x88] sm:$0xff]   ;;  %v854_v21 = vld [vmem:[%s1097_s1 + $0x90] sm:$0xff]   ;;  %v855_v22 = vld [vmem:[%s1097_s1 + $0x98] sm:$0xff]  }
   0x8   :  { %738 = vmatprep.subr.bf16.mxu0 %v884_v0  ;;  %758 = vmatprep.subr.bf16.mxu1 %v884_v0  ;;  %v580_v23 = vld [vmem:[%s1099_s2] ss:$0 sm:$0xff]  ;;  %v857_v32 = vld [vmem:[%s1097_s1 + $0xa8] sm:$0xff]   ;;  %v858_v33 = vld [vmem:[%s1097_s1 + $0xb0] sm:$0xff]  }
   0x9   :  { %v856_v31 = vld [vmem:[%s1097_s1 + $0xa0] sm:$0xff]   ;;  %v859_v34 = vld [vmem:[%s1097_s1 + $0xb8] sm:$0xff]   ;;  %v861_v36 = vld [vmem:[%s1097_s1 + $0xc8] sm:$0xff]  }
   0xa   :  { %v860_v35 = vld [vmem:[%s1097_s1 + $0xc0] sm:$0xff]   ;;  %v862_v37 = vld [vmem:[%s1097_s1 + $0xd0] sm:$0xff]   ;;  %v863_v38 = vld [vmem:[%s1097_s1 + $0xd8] sm:$0xff]  }
   0xb   :  { %739 = vmatpush3.bf16.msra.mxu0 %v838_v3  ;;  %759 = vmatpush3.bf16.msra.mxu1 %v846_v8  ;;  %v605_v39 = vld [vmem:[%s1099_s2 + $0x1] ss:$0 sm:$0xff]  ;;  %v865_v48 = vld [vmem:[%s1097_s1 + $0xe8] sm:$0xff]   ;;  %v866_v49 = vld [vmem:[%s1097_s1 + $0xf0] sm:$0xff]  }
   0xc   :  { %740 = vmatprep.subr.bf16.mxu0 %v884_v0  ;;  %760 = vmatprep.subr.bf16.mxu1 %v884_v0  ;;  %v864_v47 = vld [vmem:[%s1097_s1 + $0xe0] sm:$0xff]   ;;  %v867_v50 = vld [vmem:[%s1097_s1 + $0xf8] sm:$0xff]   ;;  %v869_v52 = vld [vmem:[%s1097_s1 + $0x108] sm:$0xff]  }
   0xd   :  { %v868_v51 = vld [vmem:[%s1097_s1 + $0x100] sm:$0xff]   ;;  %v870_v53 = vld [vmem:[%s1097_s1 + $0x110] sm:$0xff]   ;;  %v871_v54 = vld [vmem:[%s1097_s1 + $0x118] sm:$0xff]  }
   0xe   :  { %v630_v55 = vld [vmem:[%s1099_s2 + $0x2] ss:$0 sm:$0xff]  ;;  %v873_v1 = vld [vmem:[%s1097_s1 + $0x128] sm:$0xff]   ;;  %v874_v2 = vld [vmem:[%s1097_s1 + $0x130] sm:$0xff]  }
   0xf   :  { %741 = vmatpush3.bf16.msra.mxu0 %v839_v5  ;;  %761 = vmatpush3.bf16.msra.mxu1 %v847_v10  ;;  %v872_v63 = vld [vmem:[%s1097_s1 + $0x120] sm:$0xff]   ;;  %v875_v3 = vld [vmem:[%s1097_s1 + $0x138] sm:$0xff]  }
  0x10   :  { %742 = vmatprep.subr.bf16.mxu0 %v884_v0  ;;  %762 = vmatprep.subr.bf16.mxu1 %v884_v0  ;;  %v655_v4 = vld [vmem:[%s1099_s2 + $0x3] ss:$0 sm:$0xff] }
  0x13   :  { %743 = vmatpush3.bf16.msra.mxu0 %v840_v7  ;;  %763 = vmatpush3.bf16.msra.mxu1 %v848_v15 }
  0x14   :  { %744 = vmatprep.subr.bf16.mxu0 %v884_v0  ;;  %764 = vmatprep.subr.bf16.mxu1 %v884_v0 }
  0x17   :  { %745 = vmatpush3.bf16.msra.mxu0 %v841_v9  ;;  %765 = vmatpush3.bf16.msra.mxu1 %v849_v16 }
  0x18   :  { %746 = vmatprep.subr.bf16.mxu0 %v884_v0  ;;  %766 = vmatprep.subr.bf16.mxu1 %v884_v0 }
  0x1b   :  { %747 = vmatpush3.bf16.msra.mxu0 %v842_v11  ;;  %767 = vmatpush3.bf16.msra.mxu1 %v850_v17 }
  0x1c   :  { %748 = vmatprep.subr.bf16.mxu0 %v884_v0  ;;  %768 = vmatprep.subr.bf16.mxu1 %v884_v0 }
  0x1f   :  { %749 = vmatpush3.bf16.msra.mxu0 %v843_v12  ;;  %769 = vmatpush3.bf16.msra.mxu1 %v851_v18 }
  0x20   :  { %774 = vmatprep.subr.bf16.mxu0 %v884_v0  ;;  %794 = vmatprep.subr.bf16.mxu1 %v884_v0 }
  0x22   :  { %751 = vmatmul.mubr.bf16.vlgmr.msra.gmra.mrb[0].mxu0 %v16_v14 }
  0x23   :  { %790 = vmatprep.mubr.msk.bf16.mxu0 %vm885_vm0, %v884_v0  ;;  %775 = vmatpush3.bf16.msra.mxu0 %v852_v19 }
  0x24   :  { %776 = vmatprep.subr.bf16.mxu0 %v884_v0 }
  0x27   :  { %777 = vmatpush3.bf16.msra.mxu0 %v853_v20 }
  0x28   :  { %778 = vmatprep.subr.bf16.mxu0 %v884_v0 }
  0x2b   :  { %779 = vmatpush3.bf16.msra.mxu0 %v854_v21 }
  0x2c   :  { %780 = vmatprep.subr.bf16.mxu0 %v884_v0 }
  0x2f   :  { %781 = vmatpush3.bf16.msra.mxu0 %v855_v22 }
  0x30   :  { %782 = vmatprep.subr.bf16.mxu0 %v884_v0 }
  0x33   :  { %783 = vmatpush3.bf16.msra.mxu0 %v856_v31 }
  0x34   :  { %784 = vmatprep.subr.bf16.mxu0 %v884_v0 }
  0x37   :  { %785 = vmatpush3.bf16.msra.mxu0 %v857_v32 }
  0x38   :  { %786 = vmatprep.subr.bf16.mxu0 %v884_v0 }
  0x3b   :  { %787 = vmatpush3.bf16.msra.mxu0 %v858_v33 }
  0x3c   :  { %788 = vmatprep.subr.bf16.mxu0 %v884_v0 }
  0x3f   :  { %789 = vmatpush3.bf16.msra.mxu0 %v859_v34 }
  0x40   :  { %814 = vmatprep.subr.bf16.mxu0 %v884_v0 }
  0xf5   :  { %v120_v24 = vpop.f32.mrb[0].mxu0 }
  0xf6   :  { %v121_v25 = vadd.f32 %v580_v23, %v120_v24  ;;  %v752_v26 = vpop.f32.mrb[1].mxu0 }
  0xf7   :  { %v123_v27 = vpop.f32.mrb[2].mxu0 }
  0xf8   :  { %876 = vtanh.f32 %v121_v25  ;;  %v753_v28 = vpop.f32.mrb[3].mxu0 }
 0x102   :  { %v877_v29 = vpop.eup %876 }
 0x103   :  { %v127_v30 = vpack.c.bf16 %v877_v29, %v877_v29 }
 0x105   :  { %771 = vmatmul.mubr.bf16.vlgmr.msra.gmra.mrb[0].mxu1 %v127_v30 }
 0x106   :  { %810 = vmatprep.mubr.msk.bf16.mxu1 %vm885_vm0, %v884_v0  ;;  %795 = vmatpush3.bf16.msra.mxu1 %v860_v35 }
 0x107   :  { %796 = vmatprep.subr.bf16.mxu1 %v884_v0 }
 0x10a   :  { %797 = vmatpush3.bf16.msra.mxu1 %v861_v36 }
 0x10b   :  { %798 = vmatprep.subr.bf16.mxu1 %v884_v0 }
 0x10e   :  { %799 = vmatpush3.bf16.msra.mxu1 %v862_v37 }
 0x10f   :  { %800 = vmatprep.subr.bf16.mxu1 %v884_v0 }
 0x112   :  { %801 = vmatpush3.bf16.msra.mxu1 %v863_v38 }
 0x113   :  { %802 = vmatprep.subr.bf16.mxu1 %v884_v0 }
 0x116   :  { %803 = vmatpush3.bf16.msra.mxu1 %v864_v47 }
 0x117   :  { %804 = vmatprep.subr.bf16.mxu1 %v884_v0 }
 0x11a   :  { %805 = vmatpush3.bf16.msra.mxu1 %v865_v48 }
 0x11b   :  { %806 = vmatprep.subr.bf16.mxu1 %v884_v0 }
 0x11e   :  { %807 = vmatpush3.bf16.msra.mxu1 %v866_v49 }
 0x11f   :  { %808 = vmatprep.subr.bf16.mxu1 %v884_v0 }
 0x122   :  { %809 = vmatpush3.bf16.msra.mxu1 %v867_v50 }
 0x1d8   :  { %v232_v40 = vpop.f32.mrb[0].mxu1 }
 0x1d9   :  { %v233_v41 = vadd.f32 %v605_v39, %v232_v40  ;;  %v772_v42 = vpop.f32.mrb[1].mxu1 }
 0x1da   :  { %v235_v43 = vpop.f32.mrb[2].mxu1 }
 0x1db   :  { %878 = vtanh.f32 %v233_v41  ;;  %v773_v44 = vpop.f32.mrb[3].mxu1 }
 0x1e5   :  { %v879_v45 = vpop.eup %878 }
 0x1e6   :  { %v239_v46 = vpack.c.bf16 %v879_v45, %v879_v45 }
 0x1e8   :  { %791 = vmatmul.mubr.bf16.vlgmr.msra.gmra.mrb[4].mxu0 %v239_v46 }
 0x1e9   :  { %830 = vmatprep.mubr.msk.bf16.mxu0 %vm885_vm0, %v884_v0  ;;  %815 = vmatpush3.bf16.msra.mxu0 %v868_v51 }
 0x1ea   :  { %816 = vmatprep.subr.bf16.mxu0 %v884_v0 }
 0x1ed   :  { %817 = vmatpush3.bf16.msra.mxu0 %v869_v52 }
 0x1ee   :  { %818 = vmatprep.subr.bf16.mxu0 %v884_v0 }
 0x1f1   :  { %819 = vmatpush3.bf16.msra.mxu0 %v870_v53 }
 0x1f2   :  { %820 = vmatprep.subr.bf16.mxu0 %v884_v0 }
 0x1f5   :  { %821 = vmatpush3.bf16.msra.mxu0 %v871_v54 }
 0x1f6   :  { %822 = vmatprep.subr.bf16.mxu0 %v884_v0 }
 0x1f9   :  { %823 = vmatpush3.bf16.msra.mxu0 %v872_v63 }
 0x1fa   :  { %824 = vmatprep.subr.bf16.mxu0 %v884_v0 }
 0x1fd   :  { %825 = vmatpush3.bf16.msra.mxu0 %v873_v1 }
 0x1fe   :  { %826 = vmatprep.subr.bf16.mxu0 %v884_v0 }
 0x201   :  { %827 = vmatpush3.bf16.msra.mxu0 %v874_v2 }
 0x202   :  { %828 = vmatprep.subr.bf16.mxu0 %v884_v0  ;;  %v680_v0 = vld [vmem:[%s1099_s2 + $0x4] ss:$0 sm:$0xff] }
 0x205   :  { %829 = vmatpush3.bf16.msra.mxu0 %v875_v3 }
 0x2bb   :  { %v344_v56 = vpop.f32.mrb[4].mxu0 }
 0x2bc   :  { %v345_v57 = vadd.f32 %v630_v55, %v344_v56  ;;  %v792_v58 = vpop.f32.mrb[5].mxu0 }
 0x2bd   :  { %v347_v59 = vpop.f32.mrb[6].mxu0 }
 0x2be   :  { %880 = vtanh.f32 %v345_v57  ;;  %v793_v60 = vpop.f32.mrb[7].mxu0 }
 0x2c8   :  { %v881_v61 = vpop.eup %880 }
 0x2c9   :  { %v351_v62 = vpack.c.bf16 %v881_v61, %v881_v61 }
 0x2cb   :  { %811 = vmatmul.mubr.bf16.vlgmr.msra.gmra.mrb[4].mxu1 %v351_v62 }
 0x39e   :  { %v456_v5 = vpop.f32.mrb[4].mxu1 }
 0x39f   :  { %v457_v6 = vadd.f32 %v655_v4, %v456_v5  ;;  %v812_v7 = vpop.f32.mrb[5].mxu1 }
 0x3a0   :  { %v459_v8 = vpop.f32.mrb[6].mxu1 }
 0x3a1   :  { %882 = vtanh.f32 %v457_v6  ;;  %v813_v9 = vpop.f32.mrb[7].mxu1 }
 0x3ab   :  { %v883_v10 = vpop.eup %882 }
 0x3ac   :  { %v463_v11 = vpack.c.bf16 %v883_v10, %v883_v10 }
 0x3ae   :  { %831 = vmatmul.mubr.bf16.vlgmr.msra.gmra.mrb[8].mxu0 %v463_v11 }
 0x481   :  { %v568_v12 = vpop.f32.mrb[8].mxu0 }
 0x482   :  { %v569_v13 = vadd.f32 %v680_v0, %v568_v12  ;;  %v832_v14 = vpop.f32.mrb[9].mxu0 }
 0x483   :  { %v571_v15 = vpop.f32.mrb[10].mxu0 }
 0x484   :  { %v574_v16 = vpack.c.bf16 %v569_v13, %v569_v13  ;;  %v833_v17 = vpop.f32.mrb[11].mxu0 }
 0x486   :  { %575 = vst [vmem:[%s1100_s3] sm:$0xf] %v574_v16 }

</bundles_post_ra>
